<compile_context>
chip_gen: v6e
topology: v6e:2x2x1
jax: 0.10.0
libtpu: 0.0.40
codegen_flags: <defaults>
</compile_context>

<pallas_src>
import math
from functools import partial

import jax
import jax.numpy as jnp
import numpy as np
from jax import lax
from jax.experimental import pallas as pl
from jax.experimental.pallas import tpu as pltpu

HIDDEN = 64                       # hidden width of the per-point MLP (64 in PointNet)
_INV_SQRT2 = 1.0 / math.sqrt(2.0)


def _round_up(x, m):
    return -(-x // m) * m


def _vmem_capacity_bytes():
    try:
        cap = int(pltpu.get_tpu_info().vmem_capacity_bytes)
        if cap > 0:
            return cap
    except Exception:
        pass
    return 128 << 20


def _elementwise_bf16_native():
    """bf16 VALU/EUP exists on v6e/v7x; keep elementwise math in f32 on v5e and older."""
    try:
        kind = jax.devices()[0].device_kind.lower()
    except Exception:
        return True
    return not any(tag in kind for tag in ("v2", "v3", "v4", "v5"))


def _budgets():
    cap = _vmem_capacity_bytes()
    if cap <= (64 << 20):             # v7x: 64 MiB per TensorCore
        return 12 << 20, 40 << 20     # (point-tile budget, vmem_limit cap)
    return 24 << 20, 96 << 20         # v5e / v6e: 128 MiB


def _per_point_vmem_bytes(C, H, F, x_bytes, mm_bytes):
    c_pad = _round_up(max(C, 1), 8)
    b = 2 * c_pad * x_bytes           # double-buffered input block rows
    b += 4 * H * 4                    # h / erf gate / activation f32 temporaries (generous)
    b += H * mm_bytes                 # activation staged in the MXU dtype
    b += F * 4                        # f32 matmul output tile
    return b


def _choose_tiling(B, N, C, H, F, x_bytes, mm_bytes, batch_block, point_tile):
    per_point = _per_point_vmem_bytes(C, H, F, x_bytes, mm_bytes)
    tile_budget, limit_cap = _budgets()
    cap_points = max(128, (tile_budget // per_point) // 128 * 128)
    target_points = min(16 * 1024, cap_points)     # amortize ~0.35 us per grid step

    n128 = _round_up(N, 128)
    if point_tile is not None:
        assert point_tile % 128 == 0, "point_tile must be a multiple of 128"
        tn = min(point_tile, n128)
    elif n128 <= cap_points:
        tn = n128                                   # whole (padded) cloud per step
    else:
        tn = cap_points                             # huge clouds: lane-aligned tiles
    n_pad = _round_up(N, tn)                        # edge-padding is max-safe
    n_ptiles = n_pad // tn

    if n_ptiles > 1:
        bb = 1                                      # point-tiled path is single-batch
    elif batch_block is not None:
        bb = max(1, min(B, int(batch_block)))
    else:
        bb = max(1, min(B, target_points // tn, cap_points // tn))
    b_pad = _round_up(B, bb)

    est = per_point * bb * tn + (2 << 20)           # + weights / outputs / scratch / slack
    vmem_limit = int(min(limit_cap, max(32 << 20, int(1.5 * est))))
    return bb, tn, n_pad, b_pad, n_ptiles, vmem_limit


def _pointnet_kernel(x_ref, w1t_ref, b1_ref, w2t_ref, b2_ref, o_ref, lmax_ref,
                     *, bb, tn, n_ptiles):
    # x_ref:    (C, bb*tn)  elementwise dtype, points lane-dense
    # w1t_ref:  (H, C), b1_ref: (H, 1)  elementwise dtype
    # w2t_ref:  (F, H) matmul dtype,  b2_ref: (F, 1) f32
    # o_ref:    (1, F, bb) f32 -- written once per batch block (last point tile only)
    # lmax_ref: (F, 128) f32 scratch -- two-stage running max (multi point-tile path)
    x = x_ref[...]
    w1t = w1t_ref[...]
    c_dim = x.shape[0]

    # Layer 1 on the VPU: K = C (=3) is far too shallow for the MXU.
    h = w1t[:, 0:1] * x[0:1, :]
    for c in range(1, c_dim):
        h = h + w1t[:, c:c + 1] * x[c:c + 1, :]
    h = h + b1_ref[...]

    # Exact (erf-based) GELU matching torch.nn.GELU(); fused epilogue
    # h * (0.5*erf(h/sqrt2) + 0.5) saves one full-width multiply.
    # TODO(synk): evaluate the erf gate natively in bf16 once Mosaic bf16 erf lowering
    # is confirmed; it is kept in f32 here for guaranteed compilation.
    hf = h.astype(jnp.float32)
    gate = 0.5 * lax.erf(hf * _INV_SQRT2) + 0.5
    act = hf * gate

    # Layer 2 on the MXU: (F, H) @ (H, bb*tn), f32 accumulation.
    f = jnp.dot(w2t_ref[...], act.astype(w2t_ref.dtype),
                preferred_element_type=jnp.float32)

    if n_ptiles == 1:
        # One point tile covers BB whole batch elements: per-segment lane-reduce max,
        # with b2 added once per segment (hoisted past the max: exactly equivalent).
        b2c = b2_ref[...]
        for j in range(bb):
            seg_max = jnp.max(f[:, j * tn:(j + 1) * tn], axis=1, keepdims=True)
            o_ref[:, :, j:j + 1] = (seg_max + b2c)[None]
    else:
        # Huge clouds (bb == 1): fold this tile's 128-lane chunks with elementwise
        # maxima (VPU) into the (F, 128) scratch; the single cross-lane reduce and the
        # narrow output store happen only on the last point tile.
        cm = f[:, 0:128]
        for k in range(1, tn // 128):
            cm = jnp.maximum(cm, f[:, k * 128:(k + 1) * 128])
        t = pl.program_id(1)

        @pl.when(t == 0)
        def _():
            lmax_ref[...] = cm                      # first tile: direct write, no -inf fill

        @pl.when(t > 0)
        def _():
            lmax_ref[...] = jnp.maximum(lmax_ref[...], cm)

        @pl.when(t == n_ptiles - 1)
        def _():
            m = jnp.max(lmax_ref[...], axis=1, keepdims=True) + b2_ref[...]
            o_ref[...] = m[None]


def pointnet_backbone_forward(input_pc, params, *, matmul_dtype=jnp.bfloat16,
                              elementwise_dtype=None, batch_block=None,
                              point_tile=None):
    """input_pc: [B, N, pc_dim] float32 -> (features [B, feature_dim], {})."""
    w1, b1, w2, b2 = params
    B, N, C = input_pc.shape
    H = w1.shape[1]
    F = w2.shape[1]

    mm_dtype = jnp.dtype(matmul_dtype)
    if elementwise_dtype is None:
        if mm_dtype == jnp.float32:
            ew_dtype = jnp.dtype(jnp.float32)        # exact-parity path
        elif _elementwise_bf16_native():
            ew_dtype = jnp.dtype(jnp.bfloat16)       # v6e / v7x
        else:
            ew_dtype = jnp.dtype(jnp.float32)        # v5e and older
    else:
        ew_dtype = jnp.dtype(elementwise_dtype)

    bb, tn, n_pad, b_pad, n_ptiles, vmem_limit = _choose_tiling(
        B, N, C, H, F, ew_dtype.itemsize, mm_dtype.itemsize, batch_block, point_tile)

    x = input_pc
    if n_pad != N:       # duplicated points are max-safe padding
        x = jnp.pad(x, ((0, 0), (0, n_pad - N), (0, 0)), mode="edge")
    if b_pad != B:       # duplicated batch rows are sliced off below
        x = jnp.pad(x, ((0, b_pad - B), (0, 0), (0, 0)), mode="edge")
    # Channel-major, batch-flattened, lane-dense layout (one fused XLA op, bf16 on the
    # fast path so the DMA moves half the bytes).
    # TODO(synk): accept channel-major (C, B, N) input from the producer to drop this
    # HBM round-trip entirely.
    x_t = jnp.transpose(x, (2, 0, 1)).reshape(C, b_pad * n_pad).astype(ew_dtype)

    w1_t = jnp.transpose(w1).astype(ew_dtype)        # (H, C)
    b1_c = b1.reshape(H, 1).astype(ew_dtype)
    w2_t = jnp.transpose(w2).astype(mm_dtype)        # (F, H)
    b2_c = b2.reshape(F, 1).astype(jnp.float32)

    nb = b_pad // bb
    w_cols = bb * tn
    kernel = partial(_pointnet_kernel, bb=bb, tn=tn, n_ptiles=n_ptiles)

    # TODO(synk): for nb == 1 on dual-TensorCore parts (v7x), split the point range over
    # a leading parallel axis of 2 and combine the partial maxes in the wrapper.
    out = pl.pallas_call(
        kernel,
        out_shape=jax.ShapeDtypeStruct((nb, F, bb), jnp.float32),
        grid_spec=pltpu.PrefetchScalarGridSpec(
            num_scalar_prefetch=0,
            grid=(nb, n_ptiles),
            in_specs=[
                pl.BlockSpec((C, w_cols), lambda b, t: (0, b * n_ptiles + t)),
                pl.BlockSpec((H, C), lambda b, t: (0, 0)),
                pl.BlockSpec((H, 1), lambda b, t: (0, 0)),
                pl.BlockSpec((F, H), lambda b, t: (0, 0)),
                pl.BlockSpec((F, 1), lambda b, t: (0, 0)),
            ],
            out_specs=pl.BlockSpec((1, F, bb), lambda b, t: (b, 0, 0)),
            scratch_shapes=[pltpu.VMEM((F, 128), jnp.float32)],
        ),
        compiler_params=pltpu.CompilerParams(
            dimension_semantics=("parallel", "arbitrary"),
            vmem_limit_bytes=vmem_limit),
    )(x_t, w1_t, b1_c, w2_t, b2_c)

    # Tiny (nb, F, bb) -> (B, F) relayout of the pooled features (<= B*F*4 bytes).
    features = jnp.transpose(out, (0, 2, 1)).reshape(b_pad, F)[:B]
    others = {}          # forward() returns (backbone(input_pc), others)
    return features, others


def init_pointnet_params(key, pc_dim, feature_dim, hidden=HIDDEN):
    # The reference reset_parameters_ uses trunc_normal_(std=0.02) weights and zero
    # biases; small random biases are used here so the bias handling is exercised.
    k1, k2, k3, k4 = jax.random.split(key, 4)
    w1 = 0.02 * jax.random.truncated_normal(k1, -2.0, 2.0, (pc_dim, hidden), jnp.float32)
    b1 = 0.01 * jax.random.normal(k3, (hidden,), jnp.float32)
    w2 = 0.02 * jax.random.truncated_normal(k2, -2.0, 2.0, (hidden, feature_dim), jnp.float32)
    b2 = 0.01 * jax.random.normal(k4, (feature_dim,), jnp.float32)
    return w1, b1, w2, b2


def _reference_forward(input_pc, params):
    w1, b1, w2, b2 = params
    h = input_pc @ w1 + b1
    h = jax.nn.gelu(h, approximate=False)
    f = h @ w2 + b2
    return jnp.max(f, axis=1)


if __name__ == "__main__":
    B, N, PC_DIM, FEATURE_DIM = 2, 512, 3, 128

    key = jax.random.PRNGKey(0)
    k_pc, k_params = jax.random.split(key)
    input_pc = jax.random.normal(k_pc, (B, N, PC_DIM), jnp.float32)
    params = init_pointnet_params(k_params, PC_DIM, FEATURE_DIM)

    ref = _reference_forward(input_pc, params)

    # 1) f32 MXU + f32 elementwise: tight parity with the float32 torch semantics.
    feats_f32, others = pointnet_backbone_forward(input_pc, params,
                                                  matmul_dtype=jnp.float32)
    feats_f32 = jax.block_until_ready(feats_f32)
    np.testing.assert_allclose(np.asarray(feats_f32), np.asarray(ref),
                               rtol=1e-5, atol=1e-5)

    # 2) Default fast path: bf16 MXU; bf16 elementwise on bf16-native VPUs (v6e/v7x).
    feats_fast, _ = pointnet_backbone_forward(input_pc, params)
    feats_fast = jax.block_until_ready(feats_fast)
    np.testing.assert_allclose(np.asarray(feats_fast), np.asarray(ref),
                               rtol=3e-2, atol=3e-3)

    # 3) Forced multi point-tile path (running max via the (F, 128) VMEM scratch).
    feats_tiled, _ = pointnet_backbone_forward(input_pc, params,
                                               matmul_dtype=jnp.float32,
                                               point_tile=128)
    feats_tiled = jax.block_until_ready(feats_tiled)
    np.testing.assert_allclose(np.asarray(feats_tiled), np.asarray(ref),
                               rtol=1e-5, atol=1e-5)

    # 4) Ragged N and batch padding (edge-duplicated points / rows are max-safe).
    B2, N2 = 3, 500
    input_pc2 = jax.random.normal(jax.random.PRNGKey(1), (B2, N2, PC_DIM), jnp.float32)
    ref2 = _reference_forward(input_pc2, params)
    feats2, _ = pointnet_backbone_forward(input_pc2, params,
                                          matmul_dtype=jnp.float32, batch_block=2)
    feats2 = jax.block_until_ready(feats2)
    np.testing.assert_allclose(np.asarray(feats2), np.asarray(ref2),
                               rtol=1e-5, atol=1e-5)

    assert feats_f32.shape == (B, FEATURE_DIM)
    assert feats_fast.shape == (B, FEATURE_DIM)
    assert others == {}
    print("KERNEL_OK")
</pallas_src>

<mosaic_0001>
module attributes {stable_mosaic.version = 11 : i64} {
  func.func @_pointnet_kernel(%arg0: i32, %arg1: i32, %arg2: memref<3x1024xf32, #tpu.memory_space<vmem>>, %arg3: memref<64x3xf32, #tpu.memory_space<vmem>>, %arg4: memref<64x1xf32, #tpu.memory_space<vmem>>, %arg5: memref<128x64xf32, #tpu.memory_space<vmem>>, %arg6: memref<128x1xf32, #tpu.memory_space<vmem>>, %arg7: memref<1x128x2xf32, #tpu.memory_space<vmem>>, %arg8: memref<128x128xf32, #tpu.memory_space<vmem>>) attributes {dimension_semantics = [#tpu.dimension_semantics<parallel>, #tpu.dimension_semantics<arbitrary>], iteration_bounds = array<i64: 1, 1>, scalar_prefetch = 0 : i64, scratch_operands = 1 : i64, tpu.core_type = #tpu.core_type<tc>, window_params = [{transform_indices = @transform_0, window_bounds = array<i64: 3, 1024>}, {pipeline_mode = #tpu.pipeline_mode<synchronous>, transform_indices = @transform_1, window_bounds = array<i64: 64, 3>}, {pipeline_mode = #tpu.pipeline_mode<synchronous>, transform_indices = @transform_2, window_bounds = array<i64: 64, 1>}, {pipeline_mode = #tpu.pipeline_mode<synchronous>, transform_indices = @transform_3, window_bounds = array<i64: 128, 64>}, {pipeline_mode = #tpu.pipeline_mode<synchronous>, transform_indices = @transform_4, window_bounds = array<i64: 128, 1>}, {transform_indices = @transform_5, window_bounds = array<i64: 1, 128, 2>}]} {
    %c0 = arith.constant 0 : index
    %c0_0 = arith.constant 0 : index
    %0 = vector.load %arg2[%c0, %c0_0] : memref<3x1024xf32, #tpu.memory_space<vmem>>, vector<3x1024xf32>
    %c0_1 = arith.constant 0 : index
    %c0_2 = arith.constant 0 : index
    %1 = vector.load %arg3[%c0_1, %c0_2] : memref<64x3xf32, #tpu.memory_space<vmem>>, vector<64x3xf32>
    %2 = vector.extract_strided_slice %1 {offsets = [0, 0], sizes = [64, 1], strides = [1, 1]} : vector<64x3xf32> to vector<64x1xf32>
    %3 = vector.extract_strided_slice %0 {offsets = [0, 0], sizes = [1, 1024], strides = [1, 1]} : vector<3x1024xf32> to vector<1x1024xf32>
    %4 = vector.broadcast %2 : vector<64x1xf32> to vector<64x1024xf32>
    %5 = vector.broadcast %3 : vector<1x1024xf32> to vector<64x1024xf32>
    %6 = arith.mulf %4, %5 : vector<64x1024xf32>
    %7 = vector.extract_strided_slice %1 {offsets = [0, 1], sizes = [64, 1], strides = [1, 1]} : vector<64x3xf32> to vector<64x1xf32>
    %8 = vector.extract_strided_slice %0 {offsets = [1, 0], sizes = [1, 1024], strides = [1, 1]} : vector<3x1024xf32> to vector<1x1024xf32>
    %9 = vector.broadcast %7 : vector<64x1xf32> to vector<64x1024xf32>
    %10 = vector.broadcast %8 : vector<1x1024xf32> to vector<64x1024xf32>
    %11 = arith.mulf %9, %10 : vector<64x1024xf32>
    %12 = arith.addf %6, %11 : vector<64x1024xf32>
    %13 = vector.extract_strided_slice %1 {offsets = [0, 2], sizes = [64, 1], strides = [1, 1]} : vector<64x3xf32> to vector<64x1xf32>
    %14 = vector.extract_strided_slice %0 {offsets = [2, 0], sizes = [1, 1024], strides = [1, 1]} : vector<3x1024xf32> to vector<1x1024xf32>
    %15 = vector.broadcast %13 : vector<64x1xf32> to vector<64x1024xf32>
    %16 = vector.broadcast %14 : vector<1x1024xf32> to vector<64x1024xf32>
    %17 = arith.mulf %15, %16 : vector<64x1024xf32>
    %18 = arith.addf %12, %17 : vector<64x1024xf32>
    %c0_3 = arith.constant 0 : index
    %c0_4 = arith.constant 0 : index
    %19 = vector.load %arg4[%c0_3, %c0_4] : memref<64x1xf32, #tpu.memory_space<vmem>>, vector<64x1xf32>
    %20 = vector.broadcast %19 : vector<64x1xf32> to vector<64x1024xf32>
    %21 = arith.addf %18, %20 : vector<64x1024xf32>
    %cst = arith.constant 0.707106769 : f32
    %22 = vector.broadcast %cst : f32 to vector<64x1024xf32>
    %23 = arith.mulf %21, %22 : vector<64x1024xf32>
    %24 = math.erf %23 : vector<64x1024xf32>
    %cst_5 = arith.constant 5.000000e-01 : f32
    %25 = vector.broadcast %cst_5 : f32 to vector<64x1024xf32>
    %26 = arith.mulf %25, %24 : vector<64x1024xf32>
    %cst_6 = arith.constant 5.000000e-01 : f32
    %27 = vector.broadcast %cst_6 : f32 to vector<64x1024xf32>
    %28 = arith.addf %26, %27 : vector<64x1024xf32>
    %29 = arith.mulf %21, %28 : vector<64x1024xf32>
    %c0_7 = arith.constant 0 : index
    %c0_8 = arith.constant 0 : index
    %30 = vector.load %arg5[%c0_7, %c0_8] : memref<128x64xf32, #tpu.memory_space<vmem>>, vector<128x64xf32>
    %cst_9 = arith.constant dense<0.000000e+00> : vector<128x1024xf32>
    %31 = tpu.matmul %30, %29, %cst_9 {dimension_numbers = #tpu.dot_dimension_numbers<[1], [0], [0], [1], [0, 0, 1, 1], [], []>} : vector<128x64xf32>, vector<64x1024xf32>, vector<128x1024xf32> -> vector<128x1024xf32>
    %c0_10 = arith.constant 0 : index
    %c0_11 = arith.constant 0 : index
    %32 = vector.load %arg6[%c0_10, %c0_11] : memref<128x1xf32, #tpu.memory_space<vmem>>, vector<128x1xf32>
    %33 = vector.extract_strided_slice %31 {offsets = [0, 0], sizes = [128, 512], strides = [1, 1]} : vector<128x1024xf32> to vector<128x512xf32>
    %cst_12 = arith.constant dense<0xFF800000> : vector<128xf32>
    %34 = vector.multi_reduction <maximumf>, %33, %cst_12 [1] : vector<128x512xf32> to vector<128xf32>
    %35 = vector.shape_cast %34 : vector<128xf32> to vector<128x1xf32>
    %36 = arith.addf %35, %32 : vector<128x1xf32>
    %37 = vector.shape_cast %36 : vector<128x1xf32> to vector<1x128x1xf32>
    %c0_13 = arith.constant 0 : index
    %c0_14 = arith.constant 0 : index
    %c0_15 = arith.constant 0 : index
    %38 = vector.load %arg7[%c0_13, %c0_14, %c0_15] : memref<1x128x2xf32, #tpu.memory_space<vmem>>, vector<1x128x1xf32>
    tpu.vector_store %arg7[%c0_13, %c0_14, %c0_15], %37 {strides = array<i32>} : memref<1x128x2xf32, #tpu.memory_space<vmem>>, vector<1x128x1xf32>,
    %39 = vector.extract_strided_slice %31 {offsets = [0, 512], sizes = [128, 512], strides = [1, 1]} : vector<128x1024xf32> to vector<128x512xf32>
    %cst_16 = arith.constant dense<0xFF800000> : vector<128xf32>
    %40 = vector.multi_reduction <maximumf>, %39, %cst_16 [1] : vector<128x512xf32> to vector<128xf32>
    %41 = vector.shape_cast %40 : vector<128xf32> to vector<128x1xf32>
    %42 = arith.addf %41, %32 : vector<128x1xf32>
    %43 = vector.shape_cast %42 : vector<128x1xf32> to vector<1x128x1xf32>
    %c0_17 = arith.constant 0 : index
    %c0_18 = arith.constant 0 : index
    %c1 = arith.constant 1 : index
    %44 = vector.load %arg7[%c0_17, %c0_18, %c1] : memref<1x128x2xf32, #tpu.memory_space<vmem>>, vector<1x128x1xf32>
    tpu.vector_store %arg7[%c0_17, %c0_18, %c1], %43 {strides = array<i32>} : memref<1x128x2xf32, #tpu.memory_space<vmem>>, vector<1x128x1xf32>,
    return
  }
  func.func @transform_0(%arg0: i32, %arg1: i32) -> (i32, i32) {
    %c1_i32 = arith.constant 1 : i32
    %0 = arith.muli %arg0, %c1_i32 : i32
    %1 = arith.addi %0, %arg1 : i32
    %c0_i32 = arith.constant 0 : i32
    %c0_i32_0 = arith.constant 0 : i32
    return %c0_i32, %1 : i32, i32
  }
  func.func @transform_1(%arg0: i32, %arg1: i32) -> (i32, i32) {
    %c0_i32 = arith.constant 0 : i32
    %c0_i32_0 = arith.constant 0 : i32
    %c0_i32_1 = arith.constant 0 : i32
    return %c0_i32, %c0_i32_0 : i32, i32
  }
  func.func @transform_2(%arg0: i32, %arg1: i32) -> (i32, i32) {
    %c0_i32 = arith.constant 0 : i32
    %c0_i32_0 = arith.constant 0 : i32
    %c0_i32_1 = arith.constant 0 : i32
    return %c0_i32, %c0_i32_0 : i32, i32
  }
  func.func @transform_3(%arg0: i32, %arg1: i32) -> (i32, i32) {
    %c0_i32 = arith.constant 0 : i32
    %c0_i32_0 = arith.constant 0 : i32
    %c0_i32_1 = arith.constant 0 : i32
    return %c0_i32, %c0_i32_0 : i32, i32
  }
  func.func @transform_4(%arg0: i32, %arg1: i32) -> (i32, i32) {
    %c0_i32 = arith.constant 0 : i32
    %c0_i32_0 = arith.constant 0 : i32
    %c0_i32_1 = arith.constant 0 : i32
    return %c0_i32, %c0_i32_0 : i32, i32
  }
  func.func @transform_5(%arg0: i32, %arg1: i32) -> (i32, i32, i32) {
    %c0_i32 = arith.constant 0 : i32
    %c0_i32_0 = arith.constant 0 : i32
    %c0_i32_1 = arith.constant 0 : i32
    return %arg0, %c0_i32, %c0_i32_0 : i32, i32, i32
  }
}

</mosaic_0001>

<bundles_post_ra>
// kernel: tpu_custom_call.1
= control target key start
LH: loop header
LB: loop body
LE: loop exit
PB: predicated region body
PF: predicated region fallthrough
CT: control target
= control target key end

     0   :  { %v98_v0 = vlaneseq  ;;  %v2372_v1 = vmov 2   ;;  %v2373_v2 = vmov 0   ;;  %v2374_v7 = vmov 1   ;;  %s2376_s11 = smov 1   ;;  %s4119_s1 = inlined_call_operand.vmem [shape: f32[64,3], index: 1, kind: input, shape index: {}]   ;;  %s4120_s0 = inlined_call_operand.vmem [shape: f32[3,1024], index: 0, kind: input, shape index: {}]   ;;  %s4121_s2 = inlined_call_operand.vmem [shape: f32[64,1], index: 2, kind: input, shape index: {}]   ;;  %s4122_s3 = inlined_call_operand.vmem [shape: f32[128,64], index: 3, kind: input, shape index: {}]   ;;  %s4123_s4 = inlined_call_operand.vmem [shape: f32[128,1], index: 4, kind: input, shape index: {}]   ;;  %s4124_s5 = inlined_call_operand.vmem [shape: f32[1,128,2], index: 5, kind: output, shape index: {}]  }
   0x1   :  { %2230 = vset.pattern.permute.xlu0 %v2372_v1  ;;  %2224 = vset.pattern.permute.xlu1 %v2373_v2  ;;  %v52_v3 = vld [vmem:[%s4119_s1 + $0x30] sm:$0xff]  ;;  %v51_v4 = vld [vmem:[%s4119_s1 + $0x28] sm:$0xff]  ;;  %v53_v5 = vld [vmem:[%s4119_s1 + $0x38] sm:$0xff]  ;;  %v4125_v59 = vmov 0.0   ;;  %vm1146_vm0 = vcmask 523264   ;;  %vm1951_vm1 = vcmask 7168  }
   0x2   :  { %86 = vperm.xlu1 %2224, %v52_v3   ;;  %487 = vperm.xlu0 %2230, %v51_v4   ;;  %v99_v6 = vshrl.u32 %v98_v0, 7  ;;  %v2423_v8 = vld [vmem:[%s4119_s1 + $0x18] sm:$0xff]  ;;  %v2432_v11 = vld [vmem:[%s4120_s0 + $0x10] sm:$0x77]  ;;  %v2441_v13 = vld [vmem:[%s4119_s1 + $0x8] sm:$0xff]  ;;  %vm2128_vm2 = vcmask 15368  }
   0x3   :  { %v50_v23 = vld [vmem:[%s4119_s1 + $0x20] sm:$0xff]  ;;  %v705_v24 = vld [vmem:[%s4121_s2 + $0x38] sm:$0xff]  ;;  %v48_v25 = vld [vmem:[%s4119_s1 + $0x10] sm:$0xff]  ;;  %1259 = vmatprep.mubr.f32.mxu0 %v4125_v59  ;;  %1420 = vmatprep.mubr.f32.mxu1 %v4125_v59 }
   0x4   :  { %v2425_v9 = vsub.s32 4, %v99_v6  ;;  %v2427_v10 = vsub.s32 5, %v99_v6  ;;  %v2436_v12 = vsub.s32 0, %v99_v6  ;;  %v2443_v14 = vsub.s32 1, %v99_v6  ;;  %v703_v26 = vld [vmem:[%s4121_s2 + $0x28] sm:$0xff]  ;;  %v46_v27 = vld [vmem:[%s4119_s1] sm:$0xff] }
   0x5   :  { %v2445_v15 = vsub.s32 6, %v99_v6  ;;  %v2459_v20 = vsub.s32 2, %v99_v6  ;;  %v701_v28 = vld [vmem:[%s4121_s2 + $0x18] sm:$0xff]  ;;  %v704_v30 = vld [vmem:[%s4121_s2 + $0x30] sm:$0xff]  ;;  %v698_v39 = vld [vmem:[%s4121_s2] sm:$0xff] }
   0x6   :  { %2225 = vset.pattern.permute.xlu1 %v2374_v7  ;;  %2231 = vset.pattern.permute.xlu0 %v2374_v7  ;;  %v121_v16 = vrot.slane %v2432_v11, %v2425_v9  ;;  %v289_v17 = vrot.slane %v2432_v11, %v2427_v10  ;;  %v45_v29 = vld [vmem:[%s4120_s0 + $0x18] sm:$0x77]  ;;  %v117_v32 = vrot.slane %v2432_v11, %v2436_v12  ;;  %v700_v33 = vld [vmem:[%s4121_s2 + $0x10] sm:$0xff]  ;;  %v702_v51 = vld [vmem:[%s4121_s2 + $0x20] sm:$0xff] }
   0x7   :  { %259 = vperm.xlu1 %2225, %v52_v3   ;;  %263 = vperm.xlu0 %2231, %v53_v5   ;;  %v521_v21 = vrot.slane %v2432_v11, %v2445_v15  ;;  %v129_v31 = vrot.slane %v45_v29, %v2425_v9  ;;  %v125_v35 = vrot.slane %v45_v29, %v2436_v12  ;;  %v699_v52 = vld [vmem:[%s4121_s2 + $0x8] sm:$0xff]  ;;  %v42_v53 = vld [vmem:[%s4120_s0] sm:$0x77] }
   0x8   :  { %v2452_v18 = vrot.slane %v121_v16, %v2436_v12  ;;  %v2455_v19 = vrot.slane %v289_v17, %v2443_v14  ;;  %v2508_v36 = vrot.slane %v117_v32, %v2436_v12  ;;  %v297_v38 = vrot.slane %v45_v29, %v2427_v10  ;;  %v43_v54 = vld [vmem:[%s4120_s0 + $0x8] sm:$0x77] }
   0x9   :  { %v2464_v22 = vrot.slane %v521_v21, %v2459_v20  ;;  %v2504_v34 = vrot.slane %v129_v31, %v2436_v12  ;;  %v2511_v37 = vrot.slane %v125_v35, %v2436_v12  ;;  %v285_v40 = vrot.slane %v2432_v11, %v2443_v14 }
   0xa   :  { %4175 = vst [vmem:[#allocation3_spill] sm:$0xff] %v2452_v18  ;;  %4176 = vst [vmem:[#allocation4_spill] sm:$0xff] %v2455_v19  ;;  %v2521_v41 = vrot.slane %v297_v38, %v2443_v14  ;;  %v293_v42 = vrot.slane %v45_v29, %v2443_v14  ;;  %v529_v45 = vrot.slane %v45_v29, %v2445_v15 }
   0xb   :  { %2226 = vset.pattern.permute.xlu1 %v2372_v1  ;;  %247 = vperm.xlu0 %2231, %v2423_v8   ;;  %4177 = vst [vmem:[#allocation5_spill] sm:$0xff] %v2464_v22  ;;  %4178 = vst [vmem:[#allocation6_spill] sm:$0xff] %v2504_v34  ;;  %v2525_v43 = vrot.slane %v285_v40, %v2443_v14  ;;  %v517_v46 = vrot.slane %v2432_v11, %v2459_v20 }
   0xc   :  { %495 = vperm.xlu1 %2226, %v53_v5   ;;  %4179 = vst [vmem:[#allocation7_spill] sm:$0xff] %v2508_v36  ;;  %4180 = vst [vmem:[#allocation8_spill] sm:$0xff] %v2511_v37  ;;  %v2528_v44 = vrot.slane %v293_v42, %v2443_v14  ;;  %v2535_v47 = vrot.slane %v529_v45, %v2459_v20  ;;  %v525_v48 = vrot.slane %v45_v29, %v2459_v20 }
   0xd   :  { %4181 = vst [vmem:[#allocation9_spill] sm:$0xff] %v2521_v41  ;;  %4182 = vst [vmem:[#allocation10_spill] sm:$0xff] %v2525_v43  ;;  %v2540_v49 = vrot.slane %v517_v46, %v2459_v20  ;;  %v105_v55 = vrot.slane %v42_v53, %v2425_v9  ;;  %v113_v56 = vrot.slane %v43_v54, %v2425_v9 }
   0xe   :  { %4183 = vst [vmem:[#allocation11_spill] sm:$0xff] %v2528_v44  ;;  %4184 = vst [vmem:[#allocation12_spill] sm:$0xff] %v2535_v47  ;;  %v2543_v50 = vrot.slane %v525_v48, %v2459_v20  ;;  %v101_v57 = vrot.slane %v42_v53, %v2436_v12  ;;  %v109_v58 = vrot.slane %v43_v54, %v2436_v12 }
   0xf   :  { %239 = vperm.xlu0 %2231, %v2441_v13   ;;  %4185 = vst [vmem:[#allocation13_spill] sm:$0xff] %v2540_v49  ;;  %v273_v60 = vrot.slane %v42_v53, %v2427_v10  ;;  %v505_v61 = vrot.slane %v42_v53, %v2445_v15  ;;  %v281_v62 = vrot.slane %v43_v54, %v2427_v10 }
  0x10   :  { %2227 = vset.pattern.permute.xlu1 %v2374_v7  ;;  %4186 = vst [vmem:[#allocation14_spill] sm:$0xff] %v2543_v50  ;;  %v513_v63 = vrot.slane %v43_v54, %v2445_v15  ;;  %v269_v0 = vrot.slane %v42_v53, %v2443_v14  ;;  %v2586_v6 = vrot.slane %v101_v57, %v2436_v12 }
  0x11   :  { %255 = vperm.xlu1 %2227, %v51_v4   ;;  %v2592_v10 = vrot.slane %v273_v60, %v2443_v14  ;;  %v2595_v11 = vrot.slane %v505_v61, %v2459_v20 }
  0x12   :  { %v2601_v15 = vrot.slane %v513_v63, %v2459_v20  ;;  %v2604_v16 = vrot.slane %v269_v0, %v2443_v14 }
  0x13   :  { %2238 = vset.pattern.permute.xlu0 %v2373_v2 }
  0x14   :  { %91 = vperm.xlu0 %2238, %v53_v5   ;;  %v2583_v5 = vrot.slane %v113_v56, %v2436_v12 }
  0x15   :  { %2228 = vset.pattern.permute.xlu1 %v2372_v1 }
  0x16   :  { %491 = vperm.xlu1 %2228, %v52_v3   ;;  %v509_v3 = vrot.slane %v43_v54, %v2459_v20 }
  0x18   :  { %81 = vperm.xlu0 %2238, %v51_v4   ;;  %v2580_v4 = vrot.slane %v105_v55, %v2436_v12  ;;  %v2613_v21 = vrot.slane %v509_v3, %v2459_v20 }
  0x1a   :  { %2229 = vset.pattern.permute.xlu1 %v2374_v7 }
  0x1b   :  { %251 = vperm.xlu1 %2229, %v50_v23  }
  0x1c   :  { %76 = vperm.xlu0 %2238, %v50_v23  }
  0x1f   :  { %2232 = vset.pattern.permute.xlu1 %v2373_v2 }
  0x20   :  { %743 = vperm.xlu1 %2232, %v705_v24   ;;  %66 = vperm.xlu0 %2238, %v48_v25  }
  0x24   :  { %71 = vperm.xlu1 %2232, %v2423_v8   ;;  %733 = vperm.xlu0 %2238, %v703_v26  }
  0x28   :  { %2233 = vset.pattern.permute.xlu1 %v2372_v1  ;;  %56 = vperm.xlu0 %2238, %v46_v27  }
  0x29   :  { %483 = vperm.xlu1 %2233, %v50_v23  }
  0x2c   :  { %723 = vperm.xlu0 %2238, %v701_v28  }
  0x2d   :  { %2234 = vset.pattern.permute.xlu1 %v2373_v2 }
  0x2e   :  { %738 = vperm.xlu1 %2234, %v704_v30  }
  0x30   :  { %718 = vperm.xlu0 %2238, %v700_v33  }
  0x32   :  { %2235 = vset.pattern.permute.xlu1 %v2374_v7 }
  0x33   :  { %243 = vperm.xlu1 %2235, %v48_v25  }
  0x34   :  { %708 = vperm.xlu0 %2238, %v698_v39  }
  0x37   :  { %2236 = vset.pattern.permute.xlu1 %v2372_v1 }
  0x38   :  { %479 = vperm.xlu1 %2236, %v2423_v8  }
  0x3c   :  { %2237 = vset.pattern.permute.xlu1 %v2373_v2 }
  0x3d   :  { %61 = vperm.xlu1 %2237, %v2441_v13  }
  0x41   :  { %2239 = vset.pattern.permute.xlu1 %v2372_v1 }
  0x42   :  { %475 = vperm.xlu1 %2239, %v48_v25  }
  0x46   :  { %2240 = vset.pattern.permute.xlu1 %v2373_v2 }
  0x47   :  { %728 = vperm.xlu1 %2240, %v702_v51  }
  0x4b   :  { %2241 = vset.pattern.permute.xlu1 %v2374_v7  ;;  %v2589_v7 = vrot.slane %v109_v58, %v2436_v12 }
  0x4c   :  { %235 = vperm.xlu1 %2241, %v46_v27  }
  0x50   :  { %2242 = vset.pattern.permute.xlu1 %v2372_v1  ;;  %v501_v1 = vrot.slane %v42_v53, %v2459_v20 }
  0x51   :  { %471 = vperm.xlu1 %2242, %v2441_v13   ;;  %v2598_v13 = vrot.slane %v281_v62, %v2443_v14 }
  0x52   :  { %v2607_v12 = vrot.slane %v501_v1, %v2459_v20 }
  0x55   :  { %467 = vperm.xlu1 %2242, %v46_v27  }
  0x59   :  { %2243 = vset.pattern.permute.xlu1 %v2373_v2  ;;  %v277_v2 = vrot.slane %v43_v54, %v2443_v14 }
  0x5a   :  { %713 = vperm.xlu1 %2243, %v699_v52  }
  0x5b   :  { %v2610_v17 = vrot.slane %v277_v2, %v2443_v14 }
  0x7d   :  { %v87_v8 = vpop.permute.xlu1 %86  ;;  %v488_v9 = vpop.permute.xlu0 %487 }
  0x7e   :  { %v219_v23 = vmul.f32 %v2580_v4, %v87_v8  ;;  %v221_v24 = vmul.f32 %v2583_v5, %v87_v8  ;;  %v218_v25 = vmul.f32 %v2586_v6, %v87_v8  ;;  %v220_v26 = vmul.f32 %v2589_v7, %v87_v8 }
  0x7f   :  { %v2620_v27 = vmul.f32 %v2595_v11, %v488_v9  ;;  %v2623_v28 = vmul.f32 %v2601_v15, %v488_v9  ;;  %v2626_v14 = vmul.f32 %v2607_v12, %v488_v9  ;;  %v2629_v20 = vmul.f32 %v2613_v21, %v488_v9 }
  0x80   :  { %v223_v29 = vmul.f32 %v2452_v18, %v87_v8  ;;  %v225_v30 = vmul.f32 %v2504_v34, %v87_v8  ;;  %v222_v31 = vmul.f32 %v2508_v36, %v87_v8  ;;  %v224_v32 = vmul.f32 %v2511_v37, %v87_v8 }
  0x81   :  { %v2636_v38 = vmul.f32 %v2464_v22, %v488_v9  ;;  %v2639_v39 = vmul.f32 %v2535_v47, %v488_v9  ;;  %v2642_v40 = vmul.f32 %v2540_v49, %v488_v9  ;;  %v2645_v42 = vmul.f32 %v2543_v50, %v488_v9 }
  0x82   :  { %v260_v33 = vpop.permute.xlu1 %259  ;;  %v264_v35 = vpop.permute.xlu0 %263 }
  0x83   :  { %4187 = vst [vmem:[#allocation15_spill] sm:$0xff] %v2636_v38  ;;  %4188 = vst [vmem:[#allocation16_spill] sm:$0xff] %v2639_v39  ;;  %v2648_v45 = vmul.f32 %v2592_v10, %v264_v35  ;;  %v2651_v46 = vmul.f32 %v2598_v13, %v264_v35  ;;  %v2654_v48 = vmul.f32 %v2604_v16, %v264_v35 }
  0x84   :  { %4189 = vst [vmem:[#allocation17_spill] sm:$0xff] %v2642_v40  ;;  %4190 = vst [vmem:[#allocation18_spill] sm:$0xff] %v2645_v42  ;;  %v2657_v51 = vmul.f32 %v2610_v17, %v264_v35  ;;  %v387_v52 = vmul.f32 %v2592_v10, %v260_v33  ;;  %v389_v53 = vmul.f32 %v2598_v13, %v260_v33 }
  0x85   :  { %v386_v54 = vmul.f32 %v2604_v16, %v260_v33  ;;  %v388_v55 = vmul.f32 %v2610_v17, %v260_v33  ;;  %v2664_v56 = vmul.f32 %v2455_v19, %v264_v35  ;;  %v2667_v57 = vmul.f32 %v2521_v41, %v264_v35 }
  0x86   :  { %v2670_v58 = vmul.f32 %v2525_v43, %v264_v35  ;;  %v2673_v60 = vmul.f32 %v2528_v44, %v264_v35  ;;  %v248_v61 = vpop.permute.xlu0 %247  ;;  %v2675_v62 = vadd.f32 %v387_v52, %v219_v23  ;;  %v2677_v63 = vadd.f32 %v389_v53, %v221_v24 }
  0x87   :  { %v2679_v0 = vadd.f32 %v386_v54, %v218_v25  ;;  %v2681_v1 = vadd.f32 %v388_v55, %v220_v26  ;;  %v496_v2 = vpop.permute.xlu1 %495  ;;  %v2684_v3 = vmul.f32 %v2592_v10, %v248_v61  ;;  %v2687_v8 = vmul.f32 %v2598_v13, %v248_v61 }
  0x88   :  { %v2690_v9 = vmul.f32 %v2604_v16, %v248_v61  ;;  %v2693_v35 = vmul.f32 %v2610_v17, %v248_v61  ;;  %v627_v23 = vmul.f32 %v2595_v11, %v496_v2  ;;  %v629_v24 = vmul.f32 %v2601_v15, %v496_v2 }
  0x89   :  { %v626_v25 = vmul.f32 %v2607_v12, %v496_v2  ;;  %v628_v26 = vmul.f32 %v2613_v21, %v496_v2  ;;  %v2700_v52 = vmul.f32 %v2464_v22, %v496_v2  ;;  %v2703_v53 = vmul.f32 %v2535_v47, %v496_v2 }
  0x8a   :  { %v2706_v54 = vmul.f32 %v2540_v49, %v496_v2  ;;  %v2709_v55 = vmul.f32 %v2543_v50, %v496_v2  ;;  %v2711_v59 = vpop.permute.xlu0 %239  ;;  %v391_v42 = vmul.f32 %v2455_v19, %v260_v33  ;;  %v393_v40 = vmul.f32 %v2521_v41, %v260_v33 }
  0x8b   :  { %4191 = vst [vmem:[#allocation19_spill] sm:$0xff] %v2700_v52  ;;  %4192 = vst [vmem:[#allocation20_spill] sm:$0xff] %v2703_v53  ;;  %v390_v39 = vmul.f32 %v2525_v43, %v260_v33  ;;  %v392_v38 = vmul.f32 %v2528_v44, %v260_v33  ;;  %v2719_v47 = vmul.f32 %v2592_v10, %v2711_v59 }
  0x8c   :  { %4193 = vst [vmem:[#allocation21_spill] sm:$0xff] %v2706_v54  ;;  %4194 = vst [vmem:[#allocation22_spill] sm:$0xff] %v2709_v55  ;;  %v2723_v49 = vmul.f32 %v2598_v13, %v2711_v59  ;;  %v2727_v2 = vmul.f32 %v2604_v16, %v2711_v59  ;;  %v2731_v50 = vmul.f32 %v2610_v17, %v2711_v59  ;;  %v256_v22 = vpop.permute.xlu1 %255 }
  0x8d   :  { %4195 = vst [vmem:[#allocation23_spill] sm:$0xff] %v2711_v59  ;;  %4196 = vst [vmem:[#allocation24_spill] sm:$0xff] %v2719_v47  ;;  %v2733_v55 = vadd.f32 %v391_v42, %v223_v29  ;;  %v2735_v33 = vadd.f32 %v393_v40, %v225_v30  ;;  %v2737_v54 = vadd.f32 %v390_v39, %v222_v31 }
  0x8e   :  { %4197 = vst [vmem:[#allocation25_spill] sm:$0xff] %v2723_v49  ;;  %4198 = vst [vmem:[#allocation26_spill] sm:$0xff] %v2727_v2  ;;  %v2739_v47 = vadd.f32 %v392_v38, %v224_v32  ;;  %v379_v53 = vmul.f32 %v2592_v10, %v256_v22  ;;  %v381_v49 = vmul.f32 %v2598_v13, %v256_v22 }
  0x8f   :  { %4199 = vst [vmem:[#allocation27_spill] sm:$0xff] %v2735_v33  ;;  %4200 = vst [vmem:[#allocation28_spill] sm:$0xff] %v2737_v54  ;;  %v378_v52 = vmul.f32 %v2604_v16, %v256_v22  ;;  %v380_v2 = vmul.f32 %v2610_v17, %v256_v22  ;;  %v2746_v59 = vmul.f32 %v2455_v19, %v256_v22  ;;  %v92_v32 = vpop.permute.xlu0 %91 }
  0x90   :  { %4201 = vst [vmem:[#allocation29_spill] sm:$0xff] %v2739_v47  ;;  %v2749_v29 = vmul.f32 %v2521_v41, %v256_v22  ;;  %v2752_v30 = vmul.f32 %v2525_v43, %v256_v22  ;;  %v2755_v31 = vmul.f32 %v2528_v44, %v256_v22  ;;  %v2758_v38 = vmul.f32 %v2455_v19, %v248_v61 }
  0x91   :  { %4202 = vst [vmem:[#allocation30_spill] sm:$0xff] %v2746_v59  ;;  %v2761_v39 = vmul.f32 %v2521_v41, %v248_v61  ;;  %v2764_v40 = vmul.f32 %v2525_v43, %v248_v61  ;;  %v2767_v42 = vmul.f32 %v2528_v44, %v248_v61  ;;  %v226_v22 = vmul.f32 %v2586_v6, %v92_v32  ;;  %v2773_v59 = vpop.permute.xlu1 %491 }
  0x92   :  { %4203 = vst [vmem:[#allocation31_spill] sm:$0xff] %v2749_v29  ;;  %4204 = vst [vmem:[#allocation32_spill] sm:$0xff] %v2752_v30  ;;  %v227_v29 = vmul.f32 %v2580_v4, %v92_v32  ;;  %v229_v30 = vmul.f32 %v2583_v5, %v92_v32  ;;  %v2783_v61 = vmul.f32 %v2511_v37, %v92_v32 }
  0x93   :  { %4205 = vst [vmem:[#allocation33_spill] sm:$0xff] %v2755_v31  ;;  %4206 = vst [vmem:[#allocation34_spill] sm:$0xff] %v2758_v38  ;;  %v228_v31 = vmul.f32 %v2589_v7, %v92_v32  ;;  %v231_v38 = vmul.f32 %v2452_v18, %v92_v32  ;;  %v458_v43 = vadd.f32 %v2654_v48, %v226_v22  ;;  %v2789_v19 = vpop.permute.xlu0 %81 }
  0x94   :  { %4207 = vst [vmem:[#allocation35_spill] sm:$0xff] %v2761_v39  ;;  %4208 = vst [vmem:[#allocation36_spill] sm:$0xff] %v2764_v40  ;;  %v2777_v39 = vmul.f32 %v2504_v34, %v92_v32  ;;  %v2780_v40 = vmul.f32 %v2508_v36, %v92_v32  ;;  %v461_v44 = vadd.f32 %v2651_v46, %v229_v30 }
  0x95   :  { %4209 = vst [vmem:[#allocation37_spill] sm:$0xff] %v2767_v42  ;;  %4210 = vst [vmem:[#allocation38_spill] sm:$0xff] %v2773_v59  ;;  %v459_v42 = vadd.f32 %v2648_v45, %v227_v29  ;;  %v460_v41 = vadd.f32 %v2657_v51, %v228_v31  ;;  %v619_v47 = vmul.f32 %v2595_v11, %v2773_v59 }
  0x96   :  { %4211 = vst [vmem:[#allocation39_spill] sm:$0xff] %v2789_v19  ;;  %v621_v36 = vmul.f32 %v2601_v15, %v2773_v59  ;;  %v618_v32 = vmul.f32 %v2607_v12, %v2773_v59  ;;  %v620_v45 = vmul.f32 %v2613_v21, %v2773_v59  ;;  %v693_v46 = vadd.f32 %v629_v24, %v461_v44  ;;  %v2811_v34 = vpop.permute.xlu1 %251 }
  0x97   :  { %v691_v29 = vadd.f32 %v627_v23, %v459_v42  ;;  %v690_v30 = vadd.f32 %v626_v25, %v458_v43  ;;  %v692_v48 = vadd.f32 %v628_v26, %v460_v41  ;;  %v2800_v51 = vadd.f32 %v619_v47, %v2675_v62  ;;  %4212 = vst [vmem:[#allocation40_spill] sm:$0xff] %v2811_v34  ;;  %v2821_v44 = vpop.permute.xlu0 %76 }
  0x98   :  { %v2803_v31 = vadd.f32 %v621_v36, %v2677_v63  ;;  %v2806_v22 = vadd.f32 %v618_v32, %v2679_v0  ;;  %v2809_v37 = vadd.f32 %v620_v45, %v2681_v1  ;;  %v211_v23 = vmul.f32 %v2580_v4, %v2789_v19  ;;  %4213 = vst [vmem:[#allocation41_spill] sm:$0xff] %v2821_v44 }
  0x99   :  { %v213_v41 = vmul.f32 %v2583_v5, %v2789_v19  ;;  %v210_v43 = vmul.f32 %v2586_v6, %v2789_v19  ;;  %v212_v36 = vmul.f32 %v2589_v7, %v2789_v19  ;;  %v371_v47 = vmul.f32 %v2592_v10, %v2811_v34 }
  0x9a   :  { %v373_v62 = vmul.f32 %v2598_v13, %v2811_v34  ;;  %v370_v63 = vmul.f32 %v2604_v16, %v2811_v34  ;;  %v372_v0 = vmul.f32 %v2610_v17, %v2811_v34  ;;  %v443_v1 = vadd.f32 %v379_v53, %v211_v23 }
  0x9b   :  { %v445_v24 = vadd.f32 %v381_v49, %v213_v41  ;;  %v442_v25 = vadd.f32 %v378_v52, %v210_v43  ;;  %v444_v26 = vadd.f32 %v380_v2, %v212_v36  ;;  %v203_v42 = vmul.f32 %v2580_v4, %v2821_v44  ;;  %v2843_v53 = vpop.permute.xlu1 %743  ;;  %v2845_v2 = vpop.permute.xlu0 %66 }
  0x9c   :  { %v205_v32 = vmul.f32 %v2583_v5, %v2821_v44  ;;  %v202_v45 = vmul.f32 %v2586_v6, %v2821_v44  ;;  %v204_v18 = vmul.f32 %v2589_v7, %v2821_v44  ;;  %v675_v19 = vadd.f32 %v2620_v27, %v443_v1  ;;  %4214 = vst [vmem:[#allocation42_spill] sm:$0xff] %v2845_v2 }
  0x9d   :  { %v677_v34 = vadd.f32 %v2623_v28, %v445_v24  ;;  %v674_v49 = vadd.f32 %v2626_v14, %v442_v25  ;;  %v676_v52 = vadd.f32 %v2629_v20, %v444_v26  ;;  %v435_v23 = vadd.f32 %v371_v47, %v203_v42 }
  0x9e   :  { %v437_v41 = vadd.f32 %v373_v62, %v205_v32  ;;  %v434_v43 = vadd.f32 %v370_v63, %v202_v45  ;;  %v436_v36 = vadd.f32 %v372_v0, %v204_v18  ;;  %v2848_v54 = vadd.f32 %v2843_v53, %v691_v29 }
  0x9f   :  { %v2851_v44 = vadd.f32 %v2843_v53, %v693_v46  ;;  %v2854_v27 = vadd.f32 %v2843_v53, %v690_v30  ;;  %v2857_v28 = vadd.f32 %v2843_v53, %v692_v48  ;;  %v2861_v14 = vmul.f32 %v2580_v4, %v2845_v2  ;;  %v2879_v62 = vpop.permute.xlu1 %71  ;;  %v2881_v63 = vpop.permute.xlu0 %733 }
  0xa0   :  { %v2865_v20 = vmul.f32 %v2583_v5, %v2845_v2  ;;  %v2869_v18 = vmul.f32 %v2586_v6, %v2845_v2  ;;  %v2873_v29 = vmul.f32 %v2589_v7, %v2845_v2  ;;  %v867_v46 = vmul.f32 0.70710677, %v2848_v54  ;;  %4215 = vst [vmem:[#allocation43_spill] sm:$0xff] %v2879_v62  ;;  %4216 = vst [vmem:[#allocation44_spill] sm:$0xff] %v2881_v63 }
  0xa1   :  { %v869_v30 = vmul.f32 0.70710677, %v2851_v44  ;;  %v866_v48 = vmul.f32 0.70710677, %v2854_v27  ;;  %v463_v47 = vadd.f32 %v2664_v56, %v231_v38  ;;  %v868_v0 = vmul.f32 0.70710677, %v2857_v28 }
  0xa2   :  { %v465_v1 = vadd.f32 %v2667_v57, %v2777_v39  ;;  %v462_v24 = vadd.f32 %v2670_v58, %v2780_v40  ;;  %v464_v25 = vadd.f32 %v2673_v60, %v2783_v61  ;;  %2244 = verf.f32 %v867_v46 }
  0xa3   :  { %v2891_v26 = vadd.f32 %v2881_v63, %v675_v19  ;;  %v2894_v56 = vadd.f32 %v2881_v63, %v677_v34  ;;  %v2897_v38 = vadd.f32 %v2881_v63, %v674_v49  ;;  %2246 = verf.f32 %v869_v30  ;;  %v2909_v39 = vpop.permute.xlu0 %56 }
  0xa4   :  { %v2900_v42 = vadd.f32 %v2881_v63, %v676_v52  ;;  %v195_v57 = vmul.f32 %v2580_v4, %v2879_v62  ;;  %v197_v58 = vmul.f32 %v2583_v5, %v2879_v62  ;;  %2248 = verf.f32 %v866_v48  ;;  %4217 = vst [vmem:[#allocation45_spill] sm:$0xff] %v2909_v39  ;;  %v2918_v45 = vpop.permute.xlu1 %483 }
  0xa5   :  { %v851_v19 = vmul.f32 0.70710677, %v2891_v26  ;;  %v853_v60 = vmul.f32 0.70710677, %v2894_v56  ;;  %v850_v34 = vmul.f32 0.70710677, %v2897_v38  ;;  %2250 = verf.f32 %v868_v0 }
  0xa6   :  { %v852_v40 = vmul.f32 0.70710677, %v2900_v42  ;;  %v2913_v61 = vadd.f32 %v2684_v3, %v195_v57  ;;  %v2916_v32 = vadd.f32 %v2687_v8, %v197_v58  ;;  %4218 = vst [vmem:[#allocation46_spill] sm:$0xff] %v2918_v45  ;;  %v194_v49 = vmul.f32 %v2586_v6, %v2879_v62 }
  0xa7   :  { %2252 = verf.f32 %v851_v19  ;;  %v196_v52 = vmul.f32 %v2589_v7, %v2879_v62  ;;  %v2926_v46 = vmul.f32 %v2580_v4, %v2909_v39  ;;  %v603_v3 = vmul.f32 %v2595_v11, %v2918_v45 }
  0xa8   :  { %2254 = verf.f32 %v853_v60  ;;  %v605_v8 = vmul.f32 %v2601_v15, %v2918_v45  ;;  %v602_v30 = vmul.f32 %v2607_v12, %v2918_v45  ;;  %v604_v48 = vmul.f32 %v2613_v21, %v2918_v45 }
  0xa9   :  { %2256 = verf.f32 %v850_v34  ;;  %v2937_v0 = vadd.f32 %v2690_v9, %v194_v49  ;;  %v2940_v57 = vadd.f32 %v2693_v35, %v196_v52  ;;  %v2942_v58 = vadd.f32 %v603_v3, %v435_v23  ;;  %v2962_v23 = vpop.permute.xlu1 %738  ;;  %v4224_v3 = vld [vmem:[#allocation22_spill] sm:$0xff] }
  0xaa   :  { %2258 = verf.f32 %v852_v40  ;;  %v2944_v19 = vadd.f32 %v605_v8, %v437_v41  ;;  %v2946_v60 = vadd.f32 %v602_v30, %v434_v43  ;;  %v2948_v2 = vadd.f32 %v604_v48, %v436_v36  ;;  %v4221_v41 = vld [vmem:[#allocation19_spill] sm:$0xff]  ;;  %v4222_v43 = vld [vmem:[#allocation20_spill] sm:$0xff]  ;;  %v4223_v36 = vld [vmem:[#allocation21_spill] sm:$0xff] }
  0xab   :  { %v2952_v34 = vmul.f32 %v2583_v5, %v2909_v39  ;;  %v2956_v9 = vmul.f32 %v2586_v6, %v2909_v39  ;;  %v2960_v35 = vmul.f32 %v2589_v7, %v2909_v39  ;;  %v695_v40 = vadd.f32 %v4221_v41, %v463_v47 }
  0xac   :  { %v697_v49 = vadd.f32 %v4222_v43, %v465_v1  ;;  %v694_v52 = vadd.f32 %v4223_v36, %v462_v24  ;;  %v696_v8 = vadd.f32 %v4224_v3, %v464_v25  ;;  %v2970_v30 = vadd.f32 %v2962_v23, %v2800_v51 }
  0xad   :  { %4219 = vst [vmem:[#allocation47_spill] sm:$0xff] %v2956_v9  ;;  %4220 = vst [vmem:[#allocation48_spill] sm:$0xff] %v2960_v35  ;;  %v2974_v48 = vadd.f32 %v2962_v23, %v2803_v31  ;;  %v2978_v39 = vadd.f32 %v2962_v23, %v2806_v22  ;;  %v2982_v47 = vadd.f32 %v2962_v23, %v2809_v37  ;;  %v4229_v37 = vld [vmem:[#allocation5_spill] sm:$0xff] }
  0xae   :  { %v2985_v1 = vadd.f32 %v2843_v53, %v695_v40  ;;  %v2988_v24 = vadd.f32 %v2843_v53, %v697_v49  ;;  %v2991_v51 = vadd.f32 %v2843_v53, %v694_v52  ;;  %v2994_v31 = vadd.f32 %v2843_v53, %v696_v8  ;;  %v4232_v53 = vld [vmem:[#allocation12_spill] sm:$0xff]  ;;  %v3014_v62 = vpop.permute.xlu1 %243 }
  0xaf   :  { %v859_v25 = vmul.f32 0.70710677, %v2970_v30  ;;  %v861_v22 = vmul.f32 0.70710677, %v2974_v48  ;;  %v858_v41 = vmul.f32 0.70710677, %v2978_v39  ;;  %v3001_v43 = vmul.f32 %v4229_v37, %v2773_v59  ;;  %v2245_v40 = vpop.eup %2244 }
  0xb0   :  { %4225 = vst [vmem:[#allocation19_spill] sm:$0xff] %v2985_v1  ;;  %4226 = vst [vmem:[#allocation20_spill] sm:$0xff] %v2988_v24  ;;  %v860_v49 = vmul.f32 0.70710677, %v2982_v47  ;;  %v3005_v36 = vmul.f32 0.70710677, %v2985_v1  ;;  %v3012_v3 = vmul.f32 %v4232_v53, %v2773_v59  ;;  %v2247_v8 = vpop.eup %2246  ;;  %v357_v53 = vmul.f32 %v2598_v13, %v3014_v62 }
  0xb1   :  { %4227 = vst [vmem:[#allocation21_spill] sm:$0xff] %v2991_v51  ;;  %4228 = vst [vmem:[#allocation22_spill] sm:$0xff] %v2994_v31  ;;  %v3008_v52 = vmul.f32 0.70710677, %v2988_v24  ;;  %v995_v45 = vmul.f32 0.5, %v2245_v40  ;;  %2260 = verf.f32 %v859_v25  ;;  %v2249_v1 = vpop.eup %2248  ;;  %v997_v33 = vmul.f32 0.5, %v2247_v8 }
  0xb2   :  { %4230 = vst [vmem:[#allocation49_spill] sm:$0xff] %v3005_v36  ;;  %4233 = vst [vmem:[#allocation51_spill] sm:$0xff] %v3012_v3  ;;  %v3017_v37 = vmul.f32 0.70710677, %v2991_v51  ;;  %v3020_v63 = vmul.f32 0.70710677, %v2994_v31  ;;  %2262 = verf.f32 %v861_v22  ;;  %v355_v24 = vmul.f32 %v2592_v10, %v3014_v62  ;;  %v2251_v59 = vpop.eup %2250 }
  0xb3   :  { %4231 = vst [vmem:[#allocation50_spill] sm:$0xff] %v3008_v52  ;;  %v1059_v3 = vadd.f32 0.5, %v995_v45  ;;  %v994_v52 = vmul.f32 0.5, %v2249_v1  ;;  %2264 = verf.f32 %v858_v41  ;;  %v354_v25 = vmul.f32 %v2604_v16, %v3014_v62  ;;  %v3035_v1 = vpop.permute.xlu1 %479 }
  0xb4   :  { %4234 = vst [vmem:[#allocation52_spill] sm:$0xff] %v3017_v37  ;;  %4235 = vst [vmem:[#allocation53_spill] sm:$0xff] %v3020_v63  ;;  %v2253_v40 = vpop.eup %2252  ;;  %v1061_v51 = vadd.f32 0.5, %v997_v33  ;;  %v996_v31 = vmul.f32 0.5, %v2251_v59  ;;  %2266 = verf.f32 %v860_v49  ;;  %v3029_v8 = vadd.f32 %v355_v24, %v2861_v14 }
  0xb5   :  { %v2255_v22 = vpop.eup %2254  ;;  %v1123_v63 = vmul.f32 %v1059_v3, %v2848_v54  ;;  %v1058_v37 = vadd.f32 0.5, %v994_v52  ;;  %v979_v36 = vmul.f32 0.5, %v2253_v40  ;;  %v3033_v35 = vadd.f32 %v357_v53, %v2865_v20 }
  0xb6   :  { %v2257_v45 = vpop.eup %2256  ;;  %v1125_v41 = vmul.f32 %v1061_v51, %v2851_v44  ;;  %v1060_v9 = vadd.f32 0.5, %v996_v31  ;;  %v981_v33 = vmul.f32 0.5, %v2255_v22  ;;  %v3039_v59 = vadd.f32 %v354_v25, %v2869_v18  ;;  %v3053_v31 = vpop.permute.xlu0 %723 }
  0xb7   :  { %v2259_v14 = vpop.eup %2258  ;;  %1211 = vmatprep.subr.mxu0 %v1123_v63  ;;  %v1122_v24 = vmul.f32 %v1058_v37, %v2854_v27  ;;  %v1043_v54 = vadd.f32 0.5, %v979_v36  ;;  %v978_v49 = vmul.f32 0.5, %v2257_v45  ;;  %v595_v20 = vmul.f32 %v2595_v11, %v3035_v1 }
  0xb8   :  { %1372 = vmatprep.subr.mxu1 %v1125_v41  ;;  %v1124_v52 = vmul.f32 %v1060_v9, %v2857_v28  ;;  %v1045_v53 = vadd.f32 0.5, %v981_v33  ;;  %v980_v3 = vmul.f32 0.5, %v2259_v14  ;;  %v597_v44 = vmul.f32 %v2601_v15, %v3035_v1 }
  0xb9   :  { %1212 = vmatpush1.msra.mxu0 %v1122_v24  ;;  %v3048_v18 = vmul.f32 %v1043_v54, %v2891_v26  ;;  %v1042_v63 = vadd.f32 0.5, %v978_v49  ;;  %v659_v27 = vadd.f32 %v595_v20, %v2913_v61  ;;  %v594_v51 = vmul.f32 %v2607_v12, %v3035_v1  ;;  %v3061_v26 = vpop.permute.xlu1 %61 }
  0xba   :  { %1373 = vmatpush1.msra.mxu1 %v1124_v52  ;;  %v3056_v28 = vmul.f32 %v1045_v53, %v2894_v56  ;;  %v1044_v9 = vadd.f32 0.5, %v980_v3  ;;  %v661_v37 = vadd.f32 %v597_v44, %v2916_v32  ;;  %v596_v36 = vmul.f32 %v2613_v21, %v3035_v1  ;;  %v4237_v53 = vld [vmem:[#allocation25_spill] sm:$0xff] }
  0xbb   :  { %v3064_v25 = vmul.f32 %v1042_v63, %v2897_v38  ;;  %v3067_v61 = vadd.f32 %v3053_v31, %v659_v27  ;;  %v658_v40 = vadd.f32 %v594_v51, %v2937_v0  ;;  %v356_v56 = vmul.f32 %v2610_v17, %v3014_v62  ;;  %v4238_v51 = vld [vmem:[#allocation26_spill] sm:$0xff] }
  0xbc   :  { %v3073_v22 = vmul.f32 %v1044_v9, %v2900_v42  ;;  %v3076_v32 = vadd.f32 %v3053_v31, %v661_v37  ;;  %v660_v45 = vadd.f32 %v596_v36, %v2940_v57  ;;  %v179_v38 = vmul.f32 %v2580_v4, %v3061_v26  ;;  %v4236_v57 = vld [vmem:[#allocation24_spill] sm:$0xff] }
  0xbd   :  { %v835_v41 = vmul.f32 0.70710677, %v3067_v61  ;;  %v3083_v33 = vadd.f32 %v3053_v31, %v658_v40  ;;  %v420_v0 = vadd.f32 %v356_v56, %v2873_v29  ;;  %v181_v14 = vmul.f32 %v2583_v5, %v3061_v26  ;;  %v3101_v44 = vpop.permute.xlu1 %475 }
  0xbe   :  { %v2261_v42 = vpop.eup %2260  ;;  %v837_v24 = vmul.f32 0.70710677, %v3076_v32  ;;  %v3090_v54 = vadd.f32 %v3053_v31, %v660_v45  ;;  %v3093_v49 = vadd.f32 %v4236_v57, %v179_v38  ;;  %v178_v4 = vmul.f32 %v2586_v6, %v3061_v26  ;;  %v3115_v57 = vpop.permute.xlu0 %718 }
  0xbf   :  { %v2263_v20 = vpop.eup %2262  ;;  %v987_v52 = vmul.f32 0.5, %v2261_v42  ;;  %2268 = verf.f32 %v835_v41  ;;  %v834_v29 = vmul.f32 0.70710677, %v3083_v33  ;;  %v3099_v3 = vadd.f32 %v4237_v53, %v181_v14 }
  0xc0   :  { %v2265_v5 = vpop.eup %2264  ;;  %v989_v63 = vmul.f32 0.5, %v2263_v20  ;;  %2270 = verf.f32 %v837_v24  ;;  %v836_v27 = vmul.f32 0.70710677, %v3090_v54  ;;  %v3105_v9 = vadd.f32 %v4238_v51, %v178_v4 }
  0xc1   :  { %v2267_v37 = vpop.eup %2266  ;;  %v1051_v6 = vadd.f32 0.5, %v987_v52  ;;  %v986_v36 = vmul.f32 0.5, %v2265_v5  ;;  %2272 = verf.f32 %v834_v29  ;;  %v587_v40 = vmul.f32 %v2595_v11, %v3101_v44 }
  0xc2   :  { %v1053_v56 = vadd.f32 0.5, %v989_v63  ;;  %v988_v45 = vmul.f32 0.5, %v2267_v37  ;;  %2274 = verf.f32 %v836_v27  ;;  %v589_v38 = vmul.f32 %v2601_v15, %v3101_v44  ;;  %v3121_v53 = vpop.permute.xlu1 %728 }
  0xc3   :  { %v1115_v41 = vmul.f32 %v1051_v6, %v2970_v30  ;;  %v1050_v14 = vadd.f32 0.5, %v986_v36  ;;  %v651_v42 = vadd.f32 %v587_v40, %v3029_v8  ;;  %v586_v24 = vmul.f32 %v2607_v12, %v3101_v44 }
  0xc4   :  { %v1117_v4 = vmul.f32 %v1053_v56, %v2974_v48  ;;  %v1052_v20 = vadd.f32 0.5, %v988_v45  ;;  %v653_v52 = vadd.f32 %v589_v38, %v3033_v35  ;;  %v588_v29 = vmul.f32 %v2613_v21, %v3101_v44 }
  0xc5   :  { %1213 = vmatprep.subr.mxu0 %v1115_v41  ;;  %v1114_v30 = vmul.f32 %v1050_v14, %v2978_v39  ;;  %v3125_v8 = vadd.f32 %v3115_v57, %v651_v42  ;;  %v650_v5 = vadd.f32 %v586_v24, %v3039_v59  ;;  %v180_v63 = vmul.f32 %v2589_v7, %v3061_v26 }
  0xc6   :  { %1374 = vmatprep.subr.mxu1 %v1117_v4  ;;  %v1116_v48 = vmul.f32 %v1052_v20, %v2982_v47  ;;  %v3133_v35 = vadd.f32 %v3121_v53, %v2942_v58  ;;  %v3137_v27 = vadd.f32 %v3121_v53, %v2944_v19  ;;  %v3141_v39 = vadd.f32 %v3121_v53, %v2946_v60  ;;  %v4240_v4 = vld [vmem:[#allocation48_spill] sm:$0xff] }
  0xc7   :  { %1214 = vmatpush1.msra.mxu0 %v1114_v30  ;;  %v3145_v59 = vadd.f32 %v3121_v53, %v2948_v2  ;;  %v827_v7 = vmul.f32 0.70710677, %v3125_v8  ;;  %v3149_v47 = vadd.f32 %v3115_v57, %v653_v52  ;;  %v3152_v58 = vadd.f32 %v3115_v57, %v650_v5 }
  0xc8   :  { %1375 = vmatpush1.msra.mxu1 %v1116_v48  ;;  %1215 = vmatprep.subr.mxu0 %v3048_v18  ;;  %v843_v19 = vmul.f32 0.70710677, %v3133_v35  ;;  %v845_v60 = vmul.f32 0.70710677, %v3137_v27  ;;  %v842_v51 = vmul.f32 0.70710677, %v3141_v39  ;;  %v652_v37 = vadd.f32 %v588_v29, %v420_v0  ;;  %v3164_v18 = vpop.permute.xlu1 %235 }
  0xc9   :  { %1376 = vmatprep.subr.mxu1 %v3056_v28  ;;  %1216 = vmatpush1.msra.mxu0 %v3064_v25  ;;  %v844_v2 = vmul.f32 0.70710677, %v3145_v59  ;;  %2276 = verf.f32 %v827_v7  ;;  %v829_v6 = vmul.f32 0.70710677, %v3149_v47  ;;  %v826_v36 = vmul.f32 0.70710677, %v3152_v58 }
  0xca   :  { %1377 = vmatpush1.msra.mxu1 %v3073_v22  ;;  %2278 = verf.f32 %v843_v19  ;;  %v3167_v40 = vadd.f32 %v3115_v57, %v652_v37  ;;  %v412_v0 = vadd.f32 %v2731_v50, %v180_v63  ;;  %v687_v28 = vadd.f32 %v3001_v43, %v2733_v55 }
  0xcb   :  { %2280 = verf.f32 %v845_v60  ;;  %v339_v25 = vmul.f32 %v2592_v10, %v3164_v18  ;;  %v341_v56 = vmul.f32 %v2598_v13, %v3164_v18  ;;  %v338_v22 = vmul.f32 %v2604_v16, %v3164_v18  ;;  %v4239_v16 = vld [vmem:[#allocation47_spill] sm:$0xff] }
  0xcc   :  { %v2269_v45 = vpop.eup %2268  ;;  %2282 = verf.f32 %v842_v51  ;;  %v828_v38 = vmul.f32 0.70710677, %v3167_v40  ;;  %v340_v50 = vmul.f32 %v2610_v17, %v3164_v18  ;;  %v3182_v41 = vadd.f32 %v2962_v23, %v687_v28  ;;  %v3188_v29 = vpop.permute.xlu1 %471 }
  0xcd   :  { %v2271_v55 = vpop.eup %2270  ;;  %2284 = verf.f32 %v844_v2  ;;  %v963_v43 = vmul.f32 0.5, %v2269_v45  ;;  %v403_v10 = vadd.f32 %v339_v25, %v2926_v46  ;;  %v405_v13 = vadd.f32 %v341_v56, %v2952_v34  ;;  %v4241_v56 = vld [vmem:[#allocation49_spill] sm:$0xff] }
  0xce   :  { %v2273_v14 = vpop.eup %2272  ;;  %v965_v42 = vmul.f32 0.5, %v2271_v55  ;;  %2286 = verf.f32 %v829_v6  ;;  %v402_v24 = vadd.f32 %v338_v22, %v4239_v16  ;;  %v404_v20 = vadd.f32 %v340_v50, %v4240_v4  ;;  %v4244_v50 = vld [vmem:[#allocation51_spill] sm:$0xff] }
  0xcf   :  { %v2275_v52 = vpop.eup %2274  ;;  %v1027_v17 = vadd.f32 0.5, %v963_v43  ;;  %v962_v30 = vmul.f32 0.5, %v2273_v14  ;;  %2288 = verf.f32 %v826_v36  ;;  %v863_v5 = vmul.f32 0.70710677, %v3182_v41  ;;  %v4245_v14 = vld [vmem:[#allocation52_spill] sm:$0xff] }
  0xd0   :  { %v1029_v63 = vadd.f32 0.5, %v965_v42  ;;  %v964_v48 = vmul.f32 0.5, %v2275_v52  ;;  %2290 = verf.f32 %v828_v38  ;;  %v579_v46 = vmul.f32 %v2595_v11, %v3188_v29  ;;  %v3206_v36 = vpop.permute.xlu1 %467  ;;  %v4242_v38 = vld [vmem:[#allocation50_spill] sm:$0xff]  ;;  %v4247_v42 = vld [vmem:[#allocation13_spill] sm:$0xff] }
  0xd1   :  { %v3194_v34 = vmul.f32 %v1027_v17, %v3067_v61  ;;  %v1026_v7 = vadd.f32 0.5, %v962_v30  ;;  %v581_v19 = vmul.f32 %v2601_v15, %v3188_v29  ;;  %v578_v60 = vmul.f32 %v2607_v12, %v3188_v29  ;;  %v4248_v17 = vld [vmem:[#allocation53_spill] sm:$0xff] }
  0xd2   :  { %v3201_v51 = vmul.f32 %v1029_v63, %v3076_v32  ;;  %v1028_v37 = vadd.f32 0.5, %v964_v48  ;;  %v643_v2 = vadd.f32 %v579_v46, %v3093_v49  ;;  %v580_v6 = vmul.f32 %v2613_v21, %v3188_v29 }
  0xd3   :  { %v3209_v61 = vmul.f32 %v1026_v7, %v3083_v33  ;;  %v645_v28 = vadd.f32 %v581_v19, %v3099_v3  ;;  %v642_v25 = vadd.f32 %v578_v60, %v3105_v9  ;;  %2292 = verf.f32 %v4241_v56  ;;  %v4243_v9 = vld [vmem:[#allocation27_spill] sm:$0xff] }
  0xd4   :  { %v3215_v32 = vmul.f32 %v1028_v37, %v3090_v54  ;;  %v644_v22 = vadd.f32 %v580_v6, %v412_v0  ;;  %v571_v49 = vmul.f32 %v2595_v11, %v3206_v36  ;;  %v573_v45 = vmul.f32 %v2601_v15, %v3206_v36  ;;  %v4246_v11 = vld [vmem:[#allocation38_spill] sm:$0xff] }
  0xd5   :  { %v570_v33 = vmul.f32 %v2607_v12, %v3206_v36  ;;  %v572_v3 = vmul.f32 %v2613_v21, %v3206_v36  ;;  %2294 = verf.f32 %v4242_v38  ;;  %v3228_v55 = vadd.f32 %v4244_v50, %v4243_v9  ;;  %v3235_v12 = vpop.permute.xlu0 %708  ;;  %v3238_v63 = vpop.permute.xlu1 %713 }
  0xd6   :  { %v2277_v54 = vpop.eup %2276  ;;  %v635_v0 = vadd.f32 %v571_v49, %v403_v10  ;;  %v637_v43 = vadd.f32 %v573_v45, %v405_v13  ;;  %2296 = verf.f32 %v4245_v14  ;;  %v3233_v15 = vmul.f32 %v4247_v42, %v4246_v11 }
  0xd7   :  { %v2279_v16 = vpop.eup %2278  ;;  %v955_v4 = vmul.f32 0.5, %v2277_v54  ;;  %v634_v21 = vadd.f32 %v570_v33, %v402_v24  ;;  %v636_v52 = vadd.f32 %v572_v3, %v404_v20  ;;  %2298 = verf.f32 %v4248_v17 }
  0xd8   :  { %v2281_v30 = vpop.eup %2280  ;;  %v971_v48 = vmul.f32 0.5, %v2279_v16  ;;  %v3241_v10 = vadd.f32 %v3235_v12, %v635_v0  ;;  %v3244_v13 = vadd.f32 %v3235_v12, %v637_v43  ;;  %2300 = verf.f32 %v863_v5 }
  0xd9   :  { %v2283_v46 = vpop.eup %2282  ;;  %v973_v7 = vmul.f32 0.5, %v2281_v30  ;;  %v1019_v19 = vadd.f32 0.5, %v955_v4  ;;  %v3247_v60 = vadd.f32 %v3238_v63, %v643_v2  ;;  %v3250_v24 = vadd.f32 %v3238_v63, %v645_v28 }
  0xda   :  { %v2285_v20 = vpop.eup %2284  ;;  %v1035_v37 = vadd.f32 0.5, %v971_v48  ;;  %v970_v6 = vmul.f32 0.5, %v2283_v46  ;;  %v3253_v56 = vadd.f32 %v3238_v63, %v642_v25  ;;  %v3256_v49 = vadd.f32 %v3238_v63, %v644_v22 }
  0xdb   :  { %v2287_v45 = vpop.eup %2286  ;;  %v1037_v5 = vadd.f32 0.5, %v973_v7  ;;  %v972_v33 = vmul.f32 0.5, %v2285_v20  ;;  %v1083_v3 = vmul.f32 %v1019_v19, %v3125_v8  ;;  %v819_v2 = vmul.f32 0.70710677, %v3247_v60 }
  0xdc   :  { %v2289_v38 = vpop.eup %2288  ;;  %v1099_v28 = vmul.f32 %v1035_v37, %v3133_v35  ;;  %v1034_v9 = vadd.f32 0.5, %v970_v6  ;;  %v957_v50 = vmul.f32 0.5, %v2287_v45  ;;  %v821_v54 = vmul.f32 0.70710677, %v3250_v24 }
  0xdd   :  { %v2291_v0 = vpop.eup %2290  ;;  %v1101_v25 = vmul.f32 %v1037_v5, %v3137_v27  ;;  %v1036_v43 = vadd.f32 0.5, %v972_v33  ;;  %v954_v22 = vmul.f32 0.5, %v2289_v38  ;;  %2302 = verf.f32 %v819_v2  ;;  %v4250_v38 = vld [vmem:[#allocation19_spill] sm:$0xff] }
  0xde   :  { %1217 = vmatprep.subr.mxu0 %v1099_v28  ;;  %v1098_v14 = vmul.f32 %v1034_v9, %v3141_v39  ;;  %v1021_v16 = vadd.f32 0.5, %v957_v50  ;;  %v956_v8 = vmul.f32 0.5, %v2291_v0  ;;  %2304 = verf.f32 %v821_v54  ;;  %v4251_v54 = vld [vmem:[#allocation20_spill] sm:$0xff] }
  0xdf   :  { %1378 = vmatprep.subr.mxu1 %v1101_v25  ;;  %v1100_v4 = vmul.f32 %v1036_v43, %v3145_v59  ;;  %v1018_v35 = vadd.f32 0.5, %v954_v22  ;;  %v818_v17 = vmul.f32 0.70710677, %v3253_v56  ;;  %v820_v30 = vmul.f32 0.70710677, %v3256_v49  ;;  %v4252_v22 = vld [vmem:[#allocation21_spill] sm:$0xff] }
  0xe0   :  { %v2293_v48 = vpop.eup %2292  ;;  %1218 = vmatpush1.msra.mxu0 %v1098_v14  ;;  %v1085_v27 = vmul.f32 %v1021_v16, %v3149_v47  ;;  %v1020_v46 = vadd.f32 0.5, %v956_v8  ;;  %v811_v7 = vmul.f32 0.70710677, %v3241_v10  ;;  %v813_v39 = vmul.f32 0.70710677, %v3244_v13 }
  0xe1   :  { %1379 = vmatpush1.msra.mxu1 %v1100_v4  ;;  %1219 = vmatprep.subr.mxu0 %v3194_v34  ;;  %v1082_v19 = vmul.f32 %v1018_v35, %v3152_v58  ;;  %2306 = verf.f32 %v818_v17  ;;  %v3273_v59 = vadd.f32 %v3235_v12, %v634_v21  ;;  %v3276_v20 = vadd.f32 %v3235_v12, %v636_v52  ;;  %v4254_v4 = vld [vmem:[#allocation39_spill] sm:$0xff] }
  0xe2   :  { %v2295_v37 = vpop.eup %2294  ;;  %1380 = vmatprep.subr.mxu1 %v3201_v51  ;;  %1220 = vmatpush1.msra.mxu0 %v3209_v61  ;;  %v1084_v47 = vmul.f32 %v1020_v46, %v3167_v40  ;;  %2308 = verf.f32 %v820_v30  ;;  %v999_v6 = vmul.f32 0.5, %v2293_v48  ;;  %v3283_v34 = vadd.f32 %v2962_v23, %v3228_v55  ;;  %v4255_v35 = vld [vmem:[#allocation3_spill] sm:$0xff]  ;;  %v4256_v30 = vld [vmem:[#allocation22_spill] sm:$0xff] }
  0xe3   :  { %v2297_v58 = vpop.eup %2296  ;;  %1381 = vmatpush1.msra.mxu1 %v3215_v32  ;;  %1221 = vmatprep.subr.mxu0 %v1083_v3  ;;  %2310 = verf.f32 %v811_v7  ;;  %v810_v21 = vmul.f32 0.70710677, %v3273_v59  ;;  %v812_v52 = vmul.f32 0.70710677, %v3276_v20  ;;  %v1001_v51 = vmul.f32 0.5, %v2295_v37  ;;  %v4249_v3 = vld [vmem:[#allocation28_spill] sm:$0xff] }
  0xe4   :  { %v2299_v45 = vpop.eup %2298  ;;  %1382 = vmatprep.subr.mxu1 %v1085_v27  ;;  %1222 = vmatpush1.msra.mxu0 %v1082_v19  ;;  %2312 = verf.f32 %v813_v39  ;;  %v1063_v40 = vadd.f32 0.5, %v999_v6  ;;  %v998_v61 = vmul.f32 0.5, %v2297_v58  ;;  %v865_v5 = vmul.f32 0.70710677, %v3283_v34  ;;  %v4257_v46 = vld [vmem:[#allocation6_spill] sm:$0xff]  ;;  %v4258_v39 = vld [vmem:[#allocation7_spill] sm:$0xff] }
  0xe5   :  { %v2301_v55 = vpop.eup %2300  ;;  %1383 = vmatpush1.msra.mxu1 %v1084_v47  ;;  %2314 = verf.f32 %v810_v21  ;;  %v1065_v33 = vadd.f32 0.5, %v1001_v51  ;;  %v1000_v32 = vmul.f32 0.5, %v2299_v45  ;;  %v686_v2 = vadd.f32 %v3233_v15, %v4249_v3  ;;  %v4253_v15 = vld [vmem:[#allocation14_spill] sm:$0xff]  ;;  %v4259_v6 = vld [vmem:[#allocation29_spill] sm:$0xff] }
  0xe6   :  { %2316 = verf.f32 %v812_v52  ;;  %v3292_v28 = vmul.f32 %v1063_v40, %v4250_v38  ;;  %v1062_v9 = vadd.f32 0.5, %v998_v61  ;;  %v991_v50 = vmul.f32 0.5, %v2301_v55  ;;  %v4260_v58 = vld [vmem:[#allocation30_spill] sm:$0xff]  ;;  %v4261_v52 = vld [vmem:[#allocation8_spill] sm:$0xff]  ;;  %v4262_v61 = vld [vmem:[#allocation31_spill] sm:$0xff] }
  0xe7   :  { %v3295_v0 = vmul.f32 %v1065_v33, %v4251_v54  ;;  %v1064_v25 = vadd.f32 0.5, %v1000_v32  ;;  %2318 = verf.f32 %v865_v5  ;;  %v3298_v43 = vadd.f32 %v2962_v23, %v686_v2  ;;  %v4263_v55 = vld [vmem:[#allocation32_spill] sm:$0xff]  ;;  %v4265_v38 = vld [vmem:[#allocation33_spill] sm:$0xff] }
  0xe8   :  { %v3301_v14 = vmul.f32 %v1062_v9, %v4252_v22  ;;  %v1055_v16 = vadd.f32 0.5, %v991_v50  ;;  %v624_v8 = vmul.f32 %v4253_v15, %v4246_v11  ;;  %v215_v17 = vmul.f32 %v4255_v35, %v4254_v4  ;;  %v4266_v54 = vld [vmem:[#allocation16_spill] sm:$0xff]  ;;  %v4267_v22 = vld [vmem:[#allocation17_spill] sm:$0xff] }
  0xe9   :  { %v3308_v48 = vmul.f32 %v1064_v25, %v4256_v30  ;;  %v862_v27 = vmul.f32 0.70710677, %v3298_v43  ;;  %v217_v7 = vmul.f32 %v4257_v46, %v4254_v4  ;;  %v214_v19 = vmul.f32 %v4258_v39, %v4254_v4 }
  0xea   :  { %v2303_v37 = vpop.eup %2302  ;;  %v3316_v47 = vmul.f32 %v1055_v16, %v3182_v41  ;;  %v688_v11 = vadd.f32 %v624_v8, %v4259_v6  ;;  %v447_v21 = vadd.f32 %v4260_v58, %v215_v17  ;;  %v216_v51 = vmul.f32 %v4261_v52, %v4254_v4  ;;  %v4264_v41 = vld [vmem:[#allocation15_spill] sm:$0xff]  ;;  %v4268_v8 = vld [vmem:[#allocation41_spill] sm:$0xff] }
  0xeb   :  { %v2305_v45 = vpop.eup %2304  ;;  %v947_v40 = vmul.f32 0.5, %v2303_v37  ;;  %2320 = verf.f32 %v862_v27  ;;  %v449_v5 = vadd.f32 %v4262_v61, %v217_v7  ;;  %v446_v33 = vadd.f32 %v4263_v55, %v214_v19  ;;  %v4269_v7 = vld [vmem:[#allocation44_spill] sm:$0xff] }
  0xec   :  { %v949_v32 = vmul.f32 0.5, %v2305_v45  ;;  %v3325_v3 = vadd.f32 %v2962_v23, %v688_v11  ;;  %v679_v2 = vadd.f32 %v4264_v41, %v447_v21  ;;  %v448_v9 = vadd.f32 %v4265_v38, %v216_v51  ;;  %v4270_v23 = vld [vmem:[#allocation18_spill] sm:$0xff] }
  0xed   :  { %v1011_v50 = vadd.f32 0.5, %v947_v40  ;;  %v681_v25 = vadd.f32 %v4266_v54, %v449_v5  ;;  %v678_v16 = vadd.f32 %v4267_v22, %v446_v33  ;;  %v207_v4 = vmul.f32 %v4255_v35, %v4268_v8 }
  0xee   :  { %v2307_v17 = vpop.eup %2306  ;;  %v1013_v30 = vadd.f32 0.5, %v949_v32  ;;  %v864_v27 = vmul.f32 0.70710677, %v3325_v3  ;;  %v3335_v19 = vadd.f32 %v4269_v7, %v679_v2  ;;  %v680_v37 = vadd.f32 %v4270_v23, %v448_v9 }
  0xef   :  { %v2309_v6 = vpop.eup %2308  ;;  %v1075_v11 = vmul.f32 %v1011_v50, %v3247_v60  ;;  %v946_v58 = vmul.f32 0.5, %v2307_v17  ;;  %v3340_v21 = vadd.f32 %v4269_v7, %v681_v25  ;;  %v3343_v51 = vadd.f32 %v4269_v7, %v678_v16 }
  0xf0   :  { %v2311_v45 = vpop.eup %2310  ;;  %v1077_v40 = vmul.f32 %v1013_v30, %v3250_v24  ;;  %v948_v61 = vmul.f32 0.5, %v2309_v6  ;;  %2322 = verf.f32 %v864_v27  ;;  %v855_v5 = vmul.f32 0.70710677, %v3335_v19 }
  0xf1   :  { %v2313_v55 = vpop.eup %2312  ;;  %1223 = vmatprep.subr.mxu0 %v1075_v11  ;;  %v1010_v33 = vadd.f32 0.5, %v946_v58  ;;  %v939_v32 = vmul.f32 0.5, %v2311_v45  ;;  %v857_v60 = vmul.f32 0.70710677, %v3340_v21  ;;  %v854_v41 = vmul.f32 0.70710677, %v3343_v51 }
  0xf2   :  { %v2315_v2 = vpop.eup %2314  ;;  %1384 = vmatprep.subr.mxu1 %v1077_v40  ;;  %v1012_v38 = vadd.f32 0.5, %v948_v61  ;;  %v941_v9 = vmul.f32 0.5, %v2313_v55  ;;  %2324 = verf.f32 %v855_v5  ;;  %v3350_v50 = vadd.f32 %v4269_v7, %v680_v37  ;;  %v4271_v58 = vld [vmem:[#allocation40_spill] sm:$0xff]  ;;  %v4273_v61 = vld [vmem:[#allocation46_spill] sm:$0xff]  ;;  %v4274_v5 = vld [vmem:[#allocation5_spill] sm:$0xff] }
  0xf3   :  { %v2317_v24 = vpop.eup %2316  ;;  %v1074_v54 = vmul.f32 %v1010_v33, %v3253_v56  ;;  %v1003_v25 = vadd.f32 0.5, %v939_v32  ;;  %v938_v22 = vmul.f32 0.5, %v2315_v2  ;;  %2326 = verf.f32 %v857_v60  ;;  %v4272_v45 = vld [vmem:[#allocation4_spill] sm:$0xff]  ;;  %v4275_v2 = vld [vmem:[#allocation9_spill] sm:$0xff] }
  0xf4   :  { %v2319_v16 = vpop.eup %2318  ;;  %v1076_v17 = vmul.f32 %v1012_v38, %v3256_v49  ;;  %v1005_v30 = vadd.f32 0.5, %v941_v9  ;;  %v940_v27 = vmul.f32 0.5, %v2317_v24  ;;  %2328 = verf.f32 %v854_v41 }
  0xf5   :  { %1224 = vmatpush1.msra.mxu0 %v1074_v54  ;;  %v1067_v23 = vmul.f32 %v1003_v25, %v3241_v10  ;;  %v1002_v6 = vadd.f32 0.5, %v938_v22  ;;  %v993_v11 = vmul.f32 0.5, %v2319_v16  ;;  %v856_v7 = vmul.f32 0.70710677, %v3350_v50  ;;  %v3365_v10 = vld [vmem:[%s4122_s3] sm:$0xff]  ;;  %v4277_v22 = vld [vmem:[#allocation10_spill] sm:$0xff] }
  0xf6   :  { %1385 = vmatpush1.msra.mxu1 %v1076_v17  ;;  %v1069_v37 = vmul.f32 %v1005_v30, %v3244_v13  ;;  %v1004_v56 = vadd.f32 0.5, %v940_v27  ;;  %v375_v40 = vmul.f32 %v4272_v45, %v4271_v58  ;;  %v607_v49 = vmul.f32 %v4274_v5, %v4273_v61 }
  0xf7   :  { %1225 = vmatprep.subr.mxu0 %v1067_v23  ;;  %v1066_v55 = vmul.f32 %v1002_v6, %v3273_v59  ;;  %v1057_v33 = vadd.f32 0.5, %v993_v11  ;;  %2330 = verf.f32 %v856_v7  ;;  %v209_v13 = vmul.f32 %v4257_v46, %v4268_v8  ;;  %v4276_v59 = vld [vmem:[#allocation12_spill] sm:$0xff]  ;;  %v4278_v23 = vld [vmem:[#allocation11_spill] sm:$0xff] }
  0xf8   :  { %v2321_v32 = vpop.eup %2320  ;;  %1386 = vmatprep.subr.mxu1 %v1069_v37  ;;  %v1068_v60 = vmul.f32 %v1004_v56, %v3276_v20  ;;  %v439_v41 = vadd.f32 %v375_v40, %v207_v4  ;;  %v377_v38 = vmul.f32 %v4275_v2, %v4271_v58  ;;  %v609_v9 = vmul.f32 %v4276_v59, %v4273_v61  ;;  %v3403_v37 = vld [vmem:[%s4122_s3 + $0x8] sm:$0xff] }
  0xf9   :  { %1226 = vmatpush1.msra.mxu0 %v1066_v55  ;;  %v1121_v24 = vmul.f32 %v1057_v33, %v3283_v34  ;;  %v990_v54 = vmul.f32 0.5, %v2321_v32  ;;  %v206_v25 = vmul.f32 %v4258_v39, %v4268_v8  ;;  %v374_v16 = vmul.f32 %v4277_v22, %v4271_v58 }
  0xfa   :  { %1387 = vmatpush1.msra.mxu1 %v1068_v60  ;;  %2155 = vmatmul.mubr.msk.f32.vlgmr.msra.gmra.mxu0 %vm1146_vm0, %v3365_v10  ;;  %v671_v20 = vadd.f32 %v607_v49, %v439_v41  ;;  %v441_v4 = vadd.f32 %v377_v38, %v209_v13  ;;  %v606_v17 = vmul.f32 %v4247_v42, %v4273_v61 }
  0xfb   :  { %1533 = vmatprep.subr.mxu0 %v3292_v28  ;;  %1694 = vmatprep.subr.mxu1 %v3295_v0  ;;  %v1054_v34 = vadd.f32 0.5, %v990_v54  ;;  %v438_v30 = vadd.f32 %v374_v16, %v206_v25  ;;  %v208_v27 = vmul.f32 %v4261_v52, %v4268_v8  ;;  %v376_v6 = vmul.f32 %v4278_v23, %v4271_v58  ;;  %v3431_v16 = vld [vmem:[%s4122_s3 + $0x10] sm:$0xff] }
  0xfc   :  { %2171 = vmatmul.mubr.msk.f32.vlgmr.msra.gmra.mxu1 %vm1146_vm0, %v3365_v10  ;;  %1534 = vmatpush1.msra.mxu0 %v3301_v14  ;;  %v3393_v11 = vadd.f32 %v3121_v53, %v671_v20  ;;  %v673_v7 = vadd.f32 %v609_v9, %v441_v4  ;;  %v608_v28 = vmul.f32 %v4253_v15, %v4273_v61  ;;  %v4279_v58 = vmov 0.0   ;;  %v4281_v20 = vld [vmem:[#allocation34_spill] sm:$0xff] }
  0xfd   :  { %v2323_v0 = vpop.eup %2322  ;;  %1695 = vmatpush1.msra.mxu1 %v3308_v48  ;;  %1535 = vmatprep.subr.mxu0 %v3316_v47  ;;  %v1118_v8 = vmul.f32 %v1054_v34, %v3298_v43  ;;  %v670_v14 = vadd.f32 %v606_v17, %v438_v30  ;;  %v440_v56 = vadd.f32 %v376_v6, %v208_v27  ;;  %v4280_v48 = vld [vmem:[#allocation43_spill] sm:$0xff] }
  0xfe   :  { %1696 = vmatprep.subr.mxu1 %v1121_v24  ;;  %1265 = vmatprep.mubr.f32.mxu0 %v4279_v58  ;;  %v992_v40 = vmul.f32 0.5, %v2323_v0  ;;  %v847_v61 = vmul.f32 0.70710677, %v3393_v11  ;;  %v3408_v49 = vadd.f32 %v3121_v53, %v673_v7  ;;  %v199_v47 = vmul.f32 %v4255_v35, %v4280_v48 }
  0xff   :  { %v2325_v43 = vpop.eup %2324  ;;  %1536 = vmatpush1.msra.mxu0 %v1118_v8  ;;  %1426 = vmatprep.mubr.f32.mxu1 %v4279_v58  ;;  %v3414_v55 = vadd.f32 %v3121_v53, %v670_v14  ;;  %v672_v33 = vadd.f32 %v608_v28, %v440_v56  ;;  %v599_v13 = vmul.f32 %v4274_v5, %v3035_v1 }
 0x100   :  { %v2327_v32 = vpop.eup %2326  ;;  %v1056_v60 = vadd.f32 0.5, %v992_v40  ;;  %2156 = vmatmul.mubr.msk.f32.gmra.mxu0 %vm1146_vm0, %v3403_v37  ;;  %v983_v41 = vmul.f32 0.5, %v2325_v43  ;;  %2332 = verf.f32 %v847_v61  ;;  %v849_v38 = vmul.f32 0.70710677, %v3408_v49  ;;  %2172 = vmatmul.mubr.msk.f32.gmra.mxu1 %vm1146_vm0, %v3403_v37  ;;  %v4282_v61 = vld [vmem:[#allocation35_spill] sm:$0xff] }
 0x101   :  { %v2329_v9 = vpop.eup %2328  ;;  %v985_v24 = vmul.f32 0.5, %v2327_v32  ;;  %1271 = vmatprep.mubr.f32.mxu0 %v4279_v58  ;;  %v846_v54 = vmul.f32 0.70710677, %v3414_v55  ;;  %v3426_v25 = vadd.f32 %v3121_v53, %v672_v33  ;;  %v431_v4 = vadd.f32 %v4281_v20, %v199_v47  ;;  %1432 = vmatprep.mubr.f32.mxu1 %v4279_v58  ;;  %v3460_v33 = vld [vmem:[%s4122_s3 + $0x18] sm:$0xff] }
 0x102   :  { %v1120_v17 = vmul.f32 %v1056_v60, %v3325_v3  ;;  %v1047_v34 = vadd.f32 0.5, %v983_v41  ;;  %v982_v30 = vmul.f32 0.5, %v2329_v9  ;;  %2334 = verf.f32 %v849_v38  ;;  %v4283_v38 = vld [vmem:[#allocation36_spill] sm:$0xff] }
 0x103   :  { %v1049_v27 = vadd.f32 0.5, %v985_v24  ;;  %2336 = verf.f32 %v846_v54  ;;  %v848_v6 = vmul.f32 0.70710677, %v3426_v25  ;;  %v663_v53 = vadd.f32 %v599_v13, %v431_v4  ;;  %v4284_v24 = vld [vmem:[#allocation42_spill] sm:$0xff] }
 0x104   :  { %v2331_v7 = vpop.eup %2330  ;;  %1697 = vmatpush1.msra.mxu1 %v1120_v17  ;;  %v1111_v28 = vmul.f32 %v1047_v34, %v3335_v19  ;;  %v1046_v0 = vadd.f32 0.5, %v982_v30  ;;  %2157 = vmatmul.mubr.msk.f32.gmra.mxu0 %vm1146_vm0, %v3431_v16  ;;  %v201_v8 = vmul.f32 %v4257_v46, %v4280_v48  ;;  %v601_v3 = vmul.f32 %v4276_v59, %v3035_v1  ;;  %v4285_v17 = vld [vmem:[#allocation37_spill] sm:$0xff] }
 0x105   :  { %v1113_v14 = vmul.f32 %v1049_v27, %v3340_v21  ;;  %v984_v56 = vmul.f32 0.5, %v2331_v7  ;;  %2338 = verf.f32 %v848_v6  ;;  %v3446_v40 = vadd.f32 %v3053_v31, %v663_v53  ;;  %1277 = vmatprep.mubr.f32.mxu0 %v4279_v58  ;;  %2173 = vmatmul.mubr.msk.f32.gmra.mxu1 %vm1146_vm0, %v3431_v16  ;;  %v3490_v6 = vld [vmem:[%s4122_s3 + $0x20] sm:$0xff] }
 0x106   :  { %1537 = vmatprep.subr.mxu0 %v1111_v28  ;;  %v1110_v19 = vmul.f32 %v1046_v0, %v3343_v51  ;;  %v433_v47 = vadd.f32 %v4282_v61, %v201_v8  ;;  %v198_v43 = vmul.f32 %v4258_v39, %v4280_v48  ;;  %v598_v21 = vmul.f32 %v4247_v42, %v3035_v1 }
 0x107   :  { %1698 = vmatprep.subr.mxu1 %v1113_v14  ;;  %v1048_v13 = vadd.f32 0.5, %v984_v56  ;;  %v839_v32 = vmul.f32 0.70710677, %v3446_v40  ;;  %v200_v51 = vmul.f32 %v4261_v52, %v4280_v48  ;;  %v600_v60 = vmul.f32 %v4253_v15, %v3035_v1  ;;  %1438 = vmatprep.mubr.f32.mxu1 %v4279_v58 }
 0x108   :  { %1538 = vmatpush1.msra.mxu0 %v1110_v19  ;;  %v665_v41 = vadd.f32 %v601_v3, %v433_v47  ;;  %v430_v9 = vadd.f32 %v4283_v38, %v198_v43  ;;  %v191_v54 = vmul.f32 %v4255_v35, %v4284_v24  ;;  %v359_v20 = vmul.f32 %v4272_v45, %v3014_v62 }
 0x109   :  { %v1112_v4 = vmul.f32 %v1048_v13, %v3350_v50  ;;  %2340 = verf.f32 %v839_v32  ;;  %v432_v48 = vadd.f32 %v4285_v17, %v200_v51  ;;  %v591_v1 = vmul.f32 %v4274_v5, %v3101_v44  ;;  %2158 = vmatmul.mubr.msk.f32.gmra.mxu0 %vm1146_vm0, %v3460_v33  ;;  %2174 = vmatmul.mubr.msk.f32.gmra.mxu1 %vm1146_vm0, %v3460_v33 }
 0x10a   :  { %v3482_v34 = vadd.f32 %v3053_v31, %v665_v41  ;;  %v662_v30 = vadd.f32 %v598_v21, %v430_v9  ;;  %v423_v27 = vadd.f32 %v359_v20, %v191_v54  ;;  %v193_v50 = vmul.f32 %v4257_v46, %v4284_v24  ;;  %1283 = vmatprep.mubr.f32.mxu0 %v4279_v58 }
 0x10b   :  { %1699 = vmatpush1.msra.mxu1 %v1112_v4  ;;  %v664_v53 = vadd.f32 %v600_v60, %v432_v48  ;;  %v361_v7 = vmul.f32 %v4275_v2, %v3014_v62  ;;  %v593_v28 = vmul.f32 %v4276_v59, %v3101_v44  ;;  %v190_v0 = vmul.f32 %v4258_v39, %v4284_v24 }
 0x10c   :  { %v841_v8 = vmul.f32 0.70710677, %v3482_v34  ;;  %v3500_v3 = vadd.f32 %v3053_v31, %v662_v30  ;;  %v655_v14 = vadd.f32 %v591_v1, %v423_v27  ;;  %v358_v56 = vmul.f32 %v4277_v22, %v3014_v62  ;;  %1444 = vmatprep.mubr.f32.mxu1 %v4279_v58 }
 0x10d   :  { %v2333_v19 = vpop.eup %2332  ;;  %v3506_v61 = vadd.f32 %v3053_v31, %v664_v53  ;;  %v425_v47 = vadd.f32 %v361_v7, %v193_v50  ;;  %v590_v43 = vmul.f32 %v4247_v42, %v3101_v44  ;;  %v192_v21 = vmul.f32 %v4261_v52, %v4284_v24  ;;  %2159 = vmatmul.mubr.msk.f32.gmra.mxu0 %vm1146_vm0, %v3490_v6  ;;  %v3524_v31 = vld [vmem:[%s4122_s3 + $0x28] sm:$0xff]  ;;  %v3543_v7 = vld [vmem:[%s4122_s3 + $0x30] sm:$0xff] }
 0x10e   :  { %v975_v13 = vmul.f32 0.5, %v2333_v19  ;;  %2342 = verf.f32 %v841_v8  ;;  %v838_v32 = vmul.f32 0.70710677, %v3500_v3  ;;  %v3516_v51 = vadd.f32 %v3115_v57, %v655_v14  ;;  %1289 = vmatprep.mubr.f32.mxu0 %v4279_v58  ;;  %2175 = vmatmul.mubr.msk.f32.gmra.mxu1 %vm1146_vm0, %v3490_v6 }
 0x10f   :  { %v2335_v60 = vpop.eup %2334  ;;  %v840_v41 = vmul.f32 0.70710677, %v3506_v61  ;;  %v657_v38 = vadd.f32 %v593_v28, %v425_v47  ;;  %v422_v9 = vadd.f32 %v358_v56, %v190_v0  ;;  %v360_v24 = vmul.f32 %v4278_v23, %v3014_v62  ;;  %1450 = vmatprep.mubr.f32.mxu1 %v4279_v58  ;;  %v4286_v47 = vld [vmem:[#allocation23_spill] sm:$0xff] }
 0x110   :  { %v2337_v54 = vpop.eup %2336  ;;  %v1039_v20 = vadd.f32 0.5, %v975_v13  ;;  %v977_v4 = vmul.f32 0.5, %v2335_v60  ;;  %2344 = verf.f32 %v838_v32  ;;  %v831_v17 = vmul.f32 0.70710677, %v3516_v51 }
 0x111   :  { %v974_v48 = vmul.f32 0.5, %v2337_v54  ;;  %2346 = verf.f32 %v840_v41  ;;  %v3532_v1 = vadd.f32 %v3115_v57, %v657_v38  ;;  %v654_v30 = vadd.f32 %v590_v43, %v422_v9  ;;  %2160 = vmatmul.mubr.msk.f32.gmra.mxu0 %vm1146_vm0, %v3524_v31 }
 0x112   :  { %v2339_v27 = vpop.eup %2338  ;;  %v1103_v62 = vmul.f32 %v1039_v20, %v3393_v11  ;;  %v1041_v50 = vadd.f32 0.5, %v977_v4  ;;  %2348 = verf.f32 %v831_v17  ;;  %v424_v53 = vadd.f32 %v360_v24, %v192_v21  ;;  %1295 = vmatprep.mubr.f32.mxu0 %v4279_v58  ;;  %2176 = vmatmul.mubr.msk.f32.gmra.mxu1 %vm1146_vm0, %v3524_v31 }
 0x113   :  { %v1038_v28 = vadd.f32 0.5, %v974_v48  ;;  %v976_v0 = vmul.f32 0.5, %v2339_v27  ;;  %v833_v8 = vmul.f32 0.70710677, %v3532_v1  ;;  %v3547_v14 = vadd.f32 %v3115_v57, %v654_v30  ;;  %1456 = vmatprep.mubr.f32.mxu1 %v4279_v58 }
 0x114   :  { %1539 = vmatprep.subr.mxu0 %v1103_v62  ;;  %v1105_v11 = vmul.f32 %v1041_v50, %v3408_v49  ;;  %v592_v56 = vmul.f32 %v4253_v15, %v3101_v44  ;;  %v183_v19 = vmul.f32 %v4255_v35, %v3061_v26  ;;  %v351_v43 = vmul.f32 %v4272_v45, %v4286_v47 }
 0x115   :  { %v1102_v21 = vmul.f32 %v1038_v28, %v3414_v55  ;;  %v1040_v13 = vadd.f32 0.5, %v976_v0  ;;  %2350 = verf.f32 %v833_v8  ;;  %v830_v32 = vmul.f32 0.70710677, %v3547_v14  ;;  %2161 = vmatmul.mubr.msk.f32.gmra.mxu0 %vm1146_vm0, %v3543_v7  ;;  %v3568_v55 = vld [vmem:[%s4122_s3 + $0x38] sm:$0xff] }
 0x116   :  { %v2341_v60 = vpop.eup %2340  ;;  %1700 = vmatprep.subr.mxu1 %v1105_v11  ;;  %v656_v49 = vadd.f32 %v592_v56, %v424_v53  ;;  %v415_v41 = vadd.f32 %v351_v43, %v183_v19  ;;  %v583_v44 = vmul.f32 %v4274_v5, %v3188_v29  ;;  %v185_v38 = vmul.f32 %v4257_v46, %v3061_v26  ;;  %v3605_v43 = vld [vmem:[%s4122_s3 + $0x40] sm:$0xff] }
 0x117   :  { %1540 = vmatpush1.msra.mxu0 %v1102_v21  ;;  %v1104_v9 = vmul.f32 %v1040_v13, %v3426_v25  ;;  %v967_v24 = vmul.f32 0.5, %v2341_v60  ;;  %2352 = verf.f32 %v830_v32  ;;  %v353_v54 = vmul.f32 %v4275_v2, %v4286_v47  ;;  %1301 = vmatprep.mubr.f32.mxu0 %v4279_v58 }
 0x118   :  { %v3575_v20 = vadd.f32 %v3115_v57, %v656_v49  ;;  %v647_v4 = vadd.f32 %v583_v44, %v415_v41  ;;  %v585_v17 = vmul.f32 %v4276_v59, %v3188_v29  ;;  %v182_v48 = vmul.f32 %v4258_v39, %v3061_v26  ;;  %2177 = vmatmul.mubr.msk.f32.gmra.mxu1 %vm1146_vm0, %v3543_v7 }
 0x119   :  { %1701 = vmatpush1.msra.mxu1 %v1104_v9  ;;  %v1031_v25 = vadd.f32 0.5, %v967_v24  ;;  %v417_v30 = vadd.f32 %v353_v54, %v185_v38  ;;  %v350_v27 = vmul.f32 %v4277_v22, %v4286_v47  ;;  %v582_v57 = vmul.f32 %v4247_v42, %v3188_v29  ;;  %2162 = vmatmul.mubr.msk.f32.gmra.mxu0 %vm1146_vm0, %v3568_v55 }
 0x11a   :  { %v832_v62 = vmul.f32 0.70710677, %v3575_v20  ;;  %v3591_v50 = vadd.f32 %v3238_v63, %v647_v4  ;;  %v184_v53 = vmul.f32 %v4261_v52, %v3061_v26  ;;  %v352_v28 = vmul.f32 %v4278_v23, %v4286_v47  ;;  %1462 = vmatprep.mubr.f32.mxu1 %v4279_v58  ;;  %1307 = vmatprep.mubr.f32.mxu0 %v4279_v58 }
 0x11b   :  { %v2343_v0 = vpop.eup %2342  ;;  %v1095_v8 = vmul.f32 %v1031_v25, %v3446_v40  ;;  %v649_v11 = vadd.f32 %v585_v17, %v417_v30  ;;  %v414_v56 = vadd.f32 %v350_v27, %v182_v48  ;;  %v584_v19 = vmul.f32 %v4253_v15, %v3188_v29  ;;  %v4287_v29 = vld [vmem:[#allocation45_spill] sm:$0xff] }
 0x11c   :  { %v969_v26 = vmul.f32 0.5, %v2343_v0  ;;  %2354 = verf.f32 %v832_v62  ;;  %v823_v47 = vmul.f32 0.70710677, %v3591_v50  ;;  %v416_v21 = vadd.f32 %v352_v28, %v184_v53  ;;  %2178 = vmatmul.mubr.msk.f32.gmra.mxu1 %vm1146_vm0, %v3568_v55 }
 0x11d   :  { %v2345_v13 = vpop.eup %2344  ;;  %1541 = vmatprep.subr.mxu0 %v1095_v8  ;;  %v3611_v40 = vadd.f32 %v3238_v63, %v649_v11  ;;  %v646_v32 = vadd.f32 %v582_v57, %v414_v56  ;;  %v175_v60 = vmul.f32 %v4255_v35, %v4287_v29  ;;  %v343_v49 = vmul.f32 %v4272_v45, %v3164_v18  ;;  %v3628_v45 = vld [vmem:[%s4122_s3 + $0x48] sm:$0xff] }
 0x11e   :  { %v2347_v41 = vpop.eup %2346  ;;  %v1033_v44 = vadd.f32 0.5, %v969_v26  ;;  %v966_v38 = vmul.f32 0.5, %v2345_v13  ;;  %2356 = verf.f32 %v823_v47  ;;  %v648_v9 = vadd.f32 %v584_v19, %v416_v21  ;;  %2163 = vmatmul.mubr.msk.f32.gmra.mxu0 %vm1146_vm0, %v3605_v43  ;;  %1468 = vmatprep.mubr.f32.mxu1 %v4279_v58 }
 0x11f   :  { %v2349_v24 = vpop.eup %2348  ;;  %v968_v54 = vmul.f32 0.5, %v2347_v41  ;;  %v825_v4 = vmul.f32 0.70710677, %v3611_v40  ;;  %v3622_v17 = vadd.f32 %v3238_v63, %v646_v32  ;;  %v407_v35 = vadd.f32 %v343_v49, %v175_v60  ;;  %1313 = vmatprep.mubr.f32.mxu0 %v4279_v58 }
 0x120   :  { %v1097_v48 = vmul.f32 %v1033_v44, %v3482_v34  ;;  %v1030_v25 = vadd.f32 0.5, %v966_v38  ;;  %v959_v30 = vmul.f32 0.5, %v2349_v24  ;;  %v3632_v27 = vadd.f32 %v3238_v63, %v648_v9  ;;  %2179 = vmatmul.mubr.msk.f32.gmra.mxu1 %vm1146_vm0, %v3605_v43 }
 0x121   :  { %v1032_v57 = vadd.f32 0.5, %v968_v54  ;;  %2358 = verf.f32 %v825_v4  ;;  %v822_v62 = vmul.f32 0.70710677, %v3622_v17  ;;  %v575_v53 = vmul.f32 %v4274_v5, %v3206_v36  ;;  %1474 = vmatprep.mubr.f32.mxu1 %v4279_v58 }
 0x122   :  { %v2351_v28 = vpop.eup %2350  ;;  %1702 = vmatprep.subr.mxu1 %v1097_v48  ;;  %v1094_v34 = vmul.f32 %v1030_v25, %v3500_v3  ;;  %v1023_v0 = vadd.f32 0.5, %v959_v30  ;;  %v824_v63 = vmul.f32 0.70710677, %v3632_v27  ;;  %v177_v8 = vmul.f32 %v4257_v46, %v4287_v29  ;;  %2164 = vmatmul.mubr.msk.f32.gmra.mxu0 %vm1146_vm0, %v3628_v45  ;;  %v3708_v25 = vld [vmem:[%s4122_s3 + $0x60] sm:$0xff] }
 0x123   :  { %v1096_v11 = vmul.f32 %v1032_v57, %v3506_v61  ;;  %v961_v56 = vmul.f32 0.5, %v2351_v28  ;;  %2360 = verf.f32 %v822_v62  ;;  %v639_v5 = vadd.f32 %v575_v53, %v407_v35  ;;  %1319 = vmatprep.mubr.f32.mxu0 %v4279_v58  ;;  %v3658_v61 = vld [vmem:[%s4122_s3 + $0x50] sm:$0xff] }
 0x124   :  { %v2353_v19 = vpop.eup %2352  ;;  %1542 = vmatpush1.msra.mxu0 %v1094_v34  ;;  %v1087_v3 = vmul.f32 %v1023_v0, %v3516_v51  ;;  %2362 = verf.f32 %v824_v63  ;;  %v345_v26 = vmul.f32 %v4275_v2, %v3164_v18  ;;  %v577_v46 = vmul.f32 %v4276_v59, %v3206_v36  ;;  %2180 = vmatmul.mubr.msk.f32.gmra.mxu1 %vm1146_vm0, %v3628_v45 }
 0x125   :  { %1703 = vmatpush1.msra.mxu1 %v1096_v11  ;;  %v1025_v47 = vadd.f32 0.5, %v961_v56  ;;  %v958_v21 = vmul.f32 0.5, %v2353_v19  ;;  %v3661_v51 = vadd.f32 %v3235_v12, %v639_v5  ;;  %v174_v2 = vmul.f32 %v4258_v39, %v4287_v29  ;;  %1480 = vmatprep.mubr.f32.mxu1 %v4279_v58 }
 0x126   :  { %1543 = vmatprep.subr.mxu0 %v1087_v3  ;;  %v409_v59 = vadd.f32 %v345_v26, %v177_v8  ;;  %v342_v13 = vmul.f32 %v4277_v22, %v3164_v18  ;;  %v574_v32 = vmul.f32 %v4247_v42, %v3206_v36  ;;  %v176_v60 = vmul.f32 %v4261_v52, %v4287_v29  ;;  %v3734_v26 = vld [vmem:[%s4122_s3 + $0x70] sm:$0xff] }
 0x127   :  { %v1089_v49 = vmul.f32 %v1025_v47, %v3532_v1  ;;  %v1022_v41 = vadd.f32 0.5, %v958_v21  ;;  %v815_v44 = vmul.f32 0.70710677, %v3661_v51  ;;  %v344_v39 = vmul.f32 %v4278_v23, %v3164_v18  ;;  %2165 = vmatmul.mubr.msk.f32.gmra.mxu0 %vm1146_vm0, %v3658_v61  ;;  %v3687_v18 = vld [vmem:[%s4122_s3 + $0x58] sm:$0xff] }
 0x128   :  { %v641_v38 = vadd.f32 %v577_v46, %v409_v59  ;;  %v406_v9 = vadd.f32 %v342_v13, %v174_v2  ;;  %v576_v22 = vmul.f32 %v4253_v15, %v3206_v36  ;;  %1325 = vmatprep.mubr.f32.mxu0 %v4279_v58  ;;  %2181 = vmatmul.mubr.msk.f32.gmra.mxu1 %vm1146_vm0, %v3658_v61  ;;  %v3746_v21 = vld [vmem:[%s4122_s3 + $0x78] sm:$0xff] }
 0x129   :  { %v2355_v42 = vpop.eup %2354  ;;  %1704 = vmatprep.subr.mxu1 %v1089_v49  ;;  %v1086_v52 = vmul.f32 %v1022_v41, %v3547_v14  ;;  %2364 = verf.f32 %v815_v44  ;;  %v408_v1 = vadd.f32 %v344_v39, %v176_v60  ;;  %1486 = vmatprep.mubr.f32.mxu1 %v4279_v58 }
 0x12a   :  { %v960_v23 = vmul.f32 0.5, %v2355_v42  ;;  %v3691_v36 = vadd.f32 %v3235_v12, %v641_v38  ;;  %v638_v15 = vadd.f32 %v574_v32, %v406_v9 }
 0x12b   :  { %v2357_v29 = vpop.eup %2356  ;;  %1544 = vmatpush1.msra.mxu0 %v1086_v52  ;;  %v640_v24 = vadd.f32 %v576_v22, %v408_v1 }
 0x12c   :  { %v1024_v54 = vadd.f32 0.5, %v960_v23  ;;  %v951_v4 = vmul.f32 0.5, %v2357_v29  ;;  %v817_v14 = vmul.f32 0.70710677, %v3691_v36  ;;  %v3695_v35 = vadd.f32 %v3235_v12, %v638_v15  ;;  %2166 = vmatmul.mubr.msk.f32.gmra.mxu0 %vm1146_vm0, %v3687_v18  ;;  %2182 = vmatmul.mubr.msk.f32.gmra.mxu1 %vm1146_vm0, %v3687_v18 }
 0x12d   :  { %v3702_v48 = vadd.f32 %v3235_v12, %v640_v24  ;;  %1331 = vmatprep.mubr.f32.mxu0 %v4279_v58  ;;  %1492 = vmatprep.mubr.f32.mxu1 %v4279_v58 }
 0x12e   :  { %v2359_v30 = vpop.eup %2358  ;;  %v1088_v57 = vmul.f32 %v1024_v54, %v3575_v20  ;;  %v1015_v62 = vadd.f32 0.5, %v951_v4  ;;  %2366 = verf.f32 %v817_v14  ;;  %v814_v53 = vmul.f32 0.70710677, %v3695_v35  ;;  %v3723_v20 = vld [vmem:[%s4122_s3 + $0x68] sm:$0xff] }
 0x12f   :  { %v953_v28 = vmul.f32 0.5, %v2359_v30  ;;  %v816_v12 = vmul.f32 0.70710677, %v3702_v48 }
 0x130   :  { %v2361_v34 = vpop.eup %2360  ;;  %1705 = vmatpush1.msra.mxu1 %v1088_v57  ;;  %v1079_v0 = vmul.f32 %v1015_v62, %v3591_v50  ;;  %2368 = verf.f32 %v814_v53  ;;  %2167 = vmatmul.mubr.msk.f32.gmra.mxu0 %vm1146_vm0, %v3708_v25 }
 0x131   :  { %v2363_v63 = vpop.eup %2362  ;;  %v1017_v8 = vadd.f32 0.5, %v953_v28  ;;  %v950_v11 = vmul.f32 0.5, %v2361_v34  ;;  %2370 = verf.f32 %v816_v12  ;;  %1337 = vmatprep.mubr.f32.mxu0 %v4279_v58  ;;  %2183 = vmatmul.mubr.msk.f32.gmra.mxu1 %vm1146_vm0, %v3708_v25 }
 0x132   :  { %1545 = vmatprep.subr.mxu0 %v1079_v0  ;;  %v952_v50 = vmul.f32 0.5, %v2363_v63  ;;  %1498 = vmatprep.mubr.f32.mxu1 %v4279_v58 }
 0x133   :  { %v1081_v56 = vmul.f32 %v1017_v8, %v3611_v40  ;;  %v1014_v5 = vadd.f32 0.5, %v950_v11 }
 0x134   :  { %v1016_v19 = vadd.f32 0.5, %v952_v50  ;;  %2168 = vmatmul.mubr.msk.f32.gmra.mxu0 %vm1146_vm0, %v3723_v20 }
 0x135   :  { %1706 = vmatprep.subr.mxu1 %v1081_v56  ;;  %v1078_v3 = vmul.f32 %v1014_v5, %v3622_v17  ;;  %1343 = vmatprep.mubr.f32.mxu0 %v4279_v58 }
 0x136   :  { %v2365_v46 = vpop.eup %2364  ;;  %v1080_v47 = vmul.f32 %v1016_v19, %v3632_v27  ;;  %2184 = vmatmul.mubr.msk.f32.gmra.mxu1 %vm1146_vm0, %v3723_v20 }
 0x137   :  { %1546 = vmatpush1.msra.mxu0 %v1078_v3  ;;  %v943_v40 = vmul.f32 0.5, %v2365_v46  ;;  %1504 = vmatprep.mubr.f32.mxu1 %v4279_v58 }
 0x138   :  { %1707 = vmatpush1.msra.mxu1 %v1080_v47  ;;  %2169 = vmatmul.mubr.msk.f32.gmra.mxu0 %vm1146_vm0, %v3734_v26 }
 0x139   :  { %v1007_v17 = vadd.f32 0.5, %v943_v40  ;;  %1349 = vmatprep.mubr.f32.mxu0 %v4279_v58 }
 0x13a   :  { %2185 = vmatmul.mubr.msk.f32.gmra.mxu1 %vm1146_vm0, %v3734_v26 }
 0x13b   :  { %v2367_v27 = vpop.eup %2366  ;;  %v1071_v2 = vmul.f32 %v1007_v17, %v3661_v51  ;;  %1510 = vmatprep.mubr.f32.mxu1 %v4279_v58 }
 0x13c   :  { %v945_v59 = vmul.f32 0.5, %v2367_v27  ;;  %2170 = vmatmul.mubr.msk.f32.gmra.mxu0 %vm1146_vm0, %v3746_v21 }
 0x13d   :  { %v2369_v13 = vpop.eup %2368  ;;  %1547 = vmatprep.subr.mxu0 %v1071_v2  ;;  %1581 = vmatprep.mubr.f32.mxu0 %v4279_v58 }
 0x13e   :  { %v2371_v32 = vpop.eup %2370  ;;  %v1009_v60 = vadd.f32 0.5, %v945_v59  ;;  %v942_v49 = vmul.f32 0.5, %v2369_v13  ;;  %2186 = vmatmul.mubr.msk.f32.gmra.mxu1 %vm1146_vm0, %v3746_v21 }
 0x13f   :  { %v944_v41 = vmul.f32 0.5, %v2371_v32  ;;  %1742 = vmatprep.mubr.f32.mxu1 %v4279_v58 }
 0x140   :  { %v1073_v51 = vmul.f32 %v1009_v60, %v3691_v36  ;;  %v1006_v44 = vadd.f32 0.5, %v942_v49 }
 0x141   :  { %v1008_v39 = vadd.f32 0.5, %v944_v41 }
 0x142   :  { %1708 = vmatprep.subr.mxu1 %v1073_v51  ;;  %v1070_v38 = vmul.f32 %v1006_v44, %v3695_v35 }
 0x143   :  { %v1072_v9 = vmul.f32 %v1008_v39, %v3702_v48 }
 0x144   :  { %1548 = vmatpush1.msra.mxu0 %v1070_v38 }
 0x145   :  { %1709 = vmatpush1.msra.mxu1 %v1072_v9  ;;  %2187 = vmatmul.mubr.msk.f32.vlgmr.msra.gmra.mxu0 %vm1146_vm0, %v3365_v10 }
 0x146   :  { %1587 = vmatprep.mubr.f32.mxu0 %v4279_v58  ;;  %2203 = vmatmul.mubr.msk.f32.vlgmr.msra.gmra.mxu1 %vm1146_vm0, %v3365_v10 }
 0x147   :  { %1748 = vmatprep.mubr.f32.mxu1 %v4279_v58 }
 0x149   :  { %2188 = vmatmul.mubr.msk.f32.gmra.mxu0 %vm1146_vm0, %v3403_v37 }
 0x14a   :  { %1593 = vmatprep.mubr.f32.mxu0 %v4279_v58  ;;  %2204 = vmatmul.mubr.msk.f32.gmra.mxu1 %vm1146_vm0, %v3403_v37 }
 0x14b   :  { %1754 = vmatprep.mubr.f32.mxu1 %v4279_v58 }
 0x14d   :  { %2189 = vmatmul.mubr.msk.f32.gmra.mxu0 %vm1146_vm0, %v3431_v16 }
 0x14e   :  { %1599 = vmatprep.mubr.f32.mxu0 %v4279_v58  ;;  %2205 = vmatmul.mubr.msk.f32.gmra.mxu1 %vm1146_vm0, %v3431_v16 }
 0x14f   :  { %1760 = vmatprep.mubr.f32.mxu1 %v4279_v58 }
 0x151   :  { %2190 = vmatmul.mubr.msk.f32.gmra.mxu0 %vm1146_vm0, %v3460_v33 }
 0x152   :  { %1605 = vmatprep.mubr.f32.mxu0 %v4279_v58  ;;  %2206 = vmatmul.mubr.msk.f32.gmra.mxu1 %vm1146_vm0, %v3460_v33 }
 0x153   :  { %1766 = vmatprep.mubr.f32.mxu1 %v4279_v58 }
 0x155   :  { %2191 = vmatmul.mubr.msk.f32.gmra.mxu0 %vm1146_vm0, %v3490_v6 }
 0x156   :  { %1611 = vmatprep.mubr.f32.mxu0 %v4279_v58  ;;  %2207 = vmatmul.mubr.msk.f32.gmra.mxu1 %vm1146_vm0, %v3490_v6 }
 0x157   :  { %1772 = vmatprep.mubr.f32.mxu1 %v4279_v58 }
 0x159   :  { %2192 = vmatmul.mubr.msk.f32.gmra.mxu0 %vm1146_vm0, %v3524_v31 }
 0x15a   :  { %1617 = vmatprep.mubr.f32.mxu0 %v4279_v58  ;;  %2208 = vmatmul.mubr.msk.f32.gmra.mxu1 %vm1146_vm0, %v3524_v31 }
 0x15b   :  { %1778 = vmatprep.mubr.f32.mxu1 %v4279_v58 }
 0x15d   :  { %2193 = vmatmul.mubr.msk.f32.gmra.mxu0 %vm1146_vm0, %v3543_v7 }
 0x15e   :  { %1623 = vmatprep.mubr.f32.mxu0 %v4279_v58  ;;  %2209 = vmatmul.mubr.msk.f32.gmra.mxu1 %vm1146_vm0, %v3543_v7 }
 0x15f   :  { %1784 = vmatprep.mubr.f32.mxu1 %v4279_v58 }
 0x161   :  { %2194 = vmatmul.mubr.msk.f32.gmra.mxu0 %vm1146_vm0, %v3568_v55 }
 0x162   :  { %1629 = vmatprep.mubr.f32.mxu0 %v4279_v58  ;;  %2210 = vmatmul.mubr.msk.f32.gmra.mxu1 %vm1146_vm0, %v3568_v55 }
 0x163   :  { %1790 = vmatprep.mubr.f32.mxu1 %v4279_v58 }
 0x165   :  { %2195 = vmatmul.mubr.msk.f32.gmra.mxu0 %vm1146_vm0, %v3605_v43 }
 0x166   :  { %1635 = vmatprep.mubr.f32.mxu0 %v4279_v58  ;;  %2211 = vmatmul.mubr.msk.f32.gmra.mxu1 %vm1146_vm0, %v3605_v43 }
 0x167   :  { %1796 = vmatprep.mubr.f32.mxu1 %v4279_v58 }
 0x169   :  { %2196 = vmatmul.mubr.msk.f32.gmra.mxu0 %vm1146_vm0, %v3628_v45 }
 0x16a   :  { %1641 = vmatprep.mubr.f32.mxu0 %v4279_v58  ;;  %2212 = vmatmul.mubr.msk.f32.gmra.mxu1 %vm1146_vm0, %v3628_v45 }
 0x16b   :  { %1802 = vmatprep.mubr.f32.mxu1 %v4279_v58 }
 0x16d   :  { %2197 = vmatmul.mubr.msk.f32.gmra.mxu0 %vm1146_vm0, %v3658_v61 }
 0x16e   :  { %1647 = vmatprep.mubr.f32.mxu0 %v4279_v58  ;;  %2213 = vmatmul.mubr.msk.f32.gmra.mxu1 %vm1146_vm0, %v3658_v61 }
 0x16f   :  { %1808 = vmatprep.mubr.f32.mxu1 %v4279_v58 }
 0x171   :  { %2198 = vmatmul.mubr.msk.f32.gmra.mxu0 %vm1146_vm0, %v3687_v18 }
 0x172   :  { %1653 = vmatprep.mubr.f32.mxu0 %v4279_v58  ;;  %2214 = vmatmul.mubr.msk.f32.gmra.mxu1 %vm1146_vm0, %v3687_v18 }
 0x173   :  { %1814 = vmatprep.mubr.f32.mxu1 %v4279_v58 }
 0x175   :  { %2199 = vmatmul.mubr.msk.f32.gmra.mxu0 %vm1146_vm0, %v3708_v25 }
 0x176   :  { %1659 = vmatprep.mubr.f32.mxu0 %v4279_v58  ;;  %2215 = vmatmul.mubr.msk.f32.gmra.mxu1 %vm1146_vm0, %v3708_v25 }
 0x177   :  { %1820 = vmatprep.mubr.f32.mxu1 %v4279_v58 }
 0x179   :  { %2200 = vmatmul.mubr.msk.f32.gmra.mxu0 %vm1146_vm0, %v3723_v20 }
 0x17a   :  { %1665 = vmatprep.mubr.f32.mxu0 %v4279_v58  ;;  %2216 = vmatmul.mubr.msk.f32.gmra.mxu1 %vm1146_vm0, %v3723_v20 }
 0x17b   :  { %1826 = vmatprep.mubr.f32.mxu1 %v4279_v58 }
 0x17d   :  { %2201 = vmatmul.mubr.msk.f32.gmra.mxu0 %vm1146_vm0, %v3734_v26 }
 0x17e   :  { %2217 = vmatmul.mubr.msk.f32.gmra.mxu1 %vm1146_vm0, %v3734_v26  ;;  %1671 = vmatprep.mubr.f32.mxu0 %v4279_v58 }
 0x17f   :  { %1832 = vmatprep.mubr.f32.mxu1 %v4279_v58 }
 0x181   :  { %2202 = vmatmul.mubr.msk.f32.gmra.mxu0 %vm1146_vm0, %v3746_v21 }
 0x182   :  { %2218 = vmatmul.mubr.msk.f32.gmra.mxu1 %vm1146_vm0, %v3746_v21 }
 0x1ba   :  { %v1261_v10 = vpop.f32.mrf.mxu0 }
 0x1bc   :  { %v1263_v37 = vpop.f32.mrf.mxu0  ;;  %v1422_v16 = vpop.f32.mrf.mxu1 }
 0x1bd   :  { %v1855_v33 = vmax.f32 %v1261_v10, %v1263_v37 }
 0x1be   :  { %v1424_v6 = vpop.f32.mrf.mxu1 }
 0x1bf   :  { %v1856_v31 = vmax.f32 %v1855_v33, %v1422_v16 }
 0x1c0   :  { %v1267_v7 = vpop.f32.mrf.mxu0  ;;  %v1428_v55 = vpop.f32.mrf.mxu1 }
 0x1c1   :  { %v1857_v43 = vmax.f32 %v1856_v31, %v1424_v6 }
 0x1c2   :  { %v1269_v45 = vpop.f32.mrf.mxu0  ;;  %v1430_v61 = vpop.f32.mrf.mxu1 }
 0x1c3   :  { %v1860_v22 = vmax.f32 %v1267_v7, %v1269_v45  ;;  %1858 = vmax.xlane.f32.xlu0 %v1857_v43 }
 0x1c4   :  { %v1273_v58 = vpop.f32.mrf.mxu0 }
 0x1c5   :  { %v1861_v42 = vmax.f32 %v1860_v22, %v1428_v55  ;;  %v1434_v52 = vpop.f32.mrf.mxu1 }
 0x1c6   :  { %v1275_v1 = vpop.f32.mrf.mxu0 }
 0x1c7   :  { %v1862_v18 = vmax.f32 %v1861_v42, %v1430_v61  ;;  %v1865_v23 = vmax.f32 %v1273_v58, %v1275_v1  ;;  %v1436_v36 = vpop.f32.mrf.mxu1 }
 0x1c9   :  { %v1866_v15 = vmax.f32 %v1865_v23, %v1434_v52  ;;  %v1279_v29 = vpop.f32.mrf.mxu0  ;;  %1863 = vmax.xlane.f32.xlu1 %v1862_v18  ;;  %v1440_v24 = vpop.f32.mrf.mxu1 }
 0x1cb   :  { %v1867_v54 = vmax.f32 %v1866_v15, %v1436_v36  ;;  %v1281_v4 = vpop.f32.mrf.mxu0  ;;  %v1442_v14 = vpop.f32.mrf.mxu1 }
 0x1cc   :  { %v1870_v35 = vmax.f32 %v1279_v29, %v1281_v4 }
 0x1cd   :  { %v1285_v48 = vpop.f32.mrf.mxu0  ;;  %1868 = vmax.xlane.f32.xlu0 %v1867_v54 }
 0x1ce   :  { %v1871_v25 = vmax.f32 %v1870_v35, %v1440_v24  ;;  %v1446_v30 = vpop.f32.mrf.mxu1 }
 0x1cf   :  { %v1287_v57 = vpop.f32.mrf.mxu0 }
 0x1d0   :  { %v1872_v62 = vmax.f32 %v1871_v25, %v1442_v14  ;;  %v1875_v53 = vmax.f32 %v1285_v48, %v1287_v57  ;;  %v1448_v28 = vpop.f32.mrf.mxu1 }
 0x1d1   :  { %v1291_v12 = vpop.f32.mrf.mxu0 }
 0x1d2   :  { %v1876_v34 = vmax.f32 %v1875_v53, %v1446_v30  ;;  %1873 = vmax.xlane.f32.xlu1 %v1872_v62  ;;  %v1452_v0 = vpop.f32.mrf.mxu1 }
 0x1d3   :  { %v1293_v63 = vpop.f32.mrf.mxu0 }
 0x1d4   :  { %v1877_v8 = vmax.f32 %v1876_v34, %v1448_v28  ;;  %v1880_v11 = vmax.f32 %v1291_v12, %v1293_v63  ;;  %v1454_v20 = vpop.f32.mrf.mxu1 }
 0x1d5   :  { %v1297_v50 = vpop.f32.mrf.mxu0 }
 0x1d6   :  { %v1881_v56 = vmax.f32 %v1880_v11, %v1452_v0  ;;  %1878 = vmax.xlane.f32.xlu0 %v1877_v8 }
 0x1d7   :  { %v1299_v5 = vpop.f32.mrf.mxu0 }
 0x1d8   :  { %v1882_v19 = vmax.f32 %v1881_v56, %v1454_v20  ;;  %v1885_v3 = vmax.f32 %v1297_v50, %v1299_v5  ;;  %v1458_v26 = vpop.f32.mrf.mxu1 }
 0x1d9   :  { %v1303_v46 = vpop.f32.mrf.mxu0 }
 0x1da   :  { %v1886_v47 = vmax.f32 %v1885_v3, %v1458_v26  ;;  %v1460_v40 = vpop.f32.mrf.mxu1  ;;  %1883 = vmax.xlane.f32.xlu1 %v1882_v19 }
 0x1db   :  { %v1305_v17 = vpop.f32.mrf.mxu0 }
 0x1dc   :  { %v1887_v21 = vmax.f32 %v1886_v47, %v1460_v40  ;;  %v1890_v27 = vmax.f32 %v1303_v46, %v1305_v17  ;;  %v1464_v2 = vpop.f32.mrf.mxu1 }
 0x1de   :  { %v1891_v59 = vmax.f32 %v1890_v27, %v1464_v2  ;;  %v1309_v13 = vpop.f32.mrf.mxu0  ;;  %v1466_v32 = vpop.f32.mrf.mxu1  ;;  %1888 = vmax.xlane.f32.xlu0 %v1887_v21 }
 0x1e0   :  { %v1892_v60 = vmax.f32 %v1891_v59, %v1466_v32  ;;  %v1311_v49 = vpop.f32.mrf.mxu0  ;;  %v1470_v41 = vpop.f32.mrf.mxu1 }
 0x1e1   :  { %v1895_v51 = vmax.f32 %v1309_v13, %v1311_v49 }
 0x1e2   :  { %v1315_v44 = vpop.f32.mrf.mxu0  ;;  %v3855_v39 = vpop.f32.mrf.mxu1  ;;  %1893 = vmax.xlane.f32.xlu1 %v1892_v60 }
 0x1e3   :  { %v3857_v38 = vmax.f32 %v1895_v51, %v1470_v41 }
 0x1e4   :  { %v1317_v9 = vpop.f32.mrf.mxu0  ;;  %v1476_v10 = vpop.f32.mrf.mxu1 }
 0x1e5   :  { %v1897_v37 = vmax.f32 %v3857_v38, %v3855_v39  ;;  %v1900_v16 = vmax.f32 %v1315_v44, %v1317_v9  ;;  %v1840_v39 = vld [vmem:[%s4123_s4 + $0x8] sm:$0xff] }
 0x1e6   :  { %v3861_v33 = vpop.f32.mrf.mxu1 }
 0x1e7   :  { %v3863_v6 = vmax.f32 %v1900_v16, %v1476_v10  ;;  %v1321_v31 = vpop.f32.mrf.mxu0 }
 0x1e8   :  { %v1482_v7 = vpop.f32.mrf.mxu1 }
 0x1e9   :  { %v1902_v55 = vmax.f32 %v3863_v6, %v3861_v33  ;;  %v1323_v43 = vpop.f32.mrf.mxu0  ;;  %v1841_v6 = vld [vmem:[%s4123_s4 + $0x10] sm:$0xff] }
 0x1ea   :  { %v1905_v45 = vmax.f32 %v1321_v31, %v1323_v43  ;;  %v3867_v61 = vpop.f32.mrf.mxu1 }
 0x1ec   :  { %v3869_v22 = vmax.f32 %v1905_v45, %v1482_v7  ;;  %v1327_v58 = vpop.f32.mrf.mxu0  ;;  %v1488_v42 = vpop.f32.mrf.mxu1 }
 0x1ee   :  { %v1907_v52 = vmax.f32 %v3869_v22, %v3867_v61  ;;  %v1329_v1 = vpop.f32.mrf.mxu0  ;;  %v3873_v18 = vpop.f32.mrf.mxu1  ;;  %v1842_v22 = vld [vmem:[%s4123_s4 + $0x18] sm:$0xff] }
 0x1ef   :  { %v1910_v23 = vmax.f32 %v1327_v58, %v1329_v1 }
 0x1f0   :  { %v1333_v36 = vpop.f32.mrf.mxu0 }
 0x1f1   :  { %v3875_v15 = vmax.f32 %v1910_v23, %v1488_v42  ;;  %v1494_v29 = vpop.f32.mrf.mxu1 }
 0x1f2   :  { %v1335_v24 = vpop.f32.mrf.mxu0 }
 0x1f3   :  { %v1912_v54 = vmax.f32 %v3875_v15, %v3873_v18  ;;  %v1915_v4 = vmax.f32 %v1333_v36, %v1335_v24  ;;  %v3879_v14 = vpop.f32.mrf.mxu1  ;;  %v1843_v15 = vld [vmem:[%s4123_s4 + $0x20] sm:$0xff] }
 0x1f4   :  { %v1339_v35 = vpop.f32.mrf.mxu0 }
 0x1f5   :  { %v3881_v48 = vmax.f32 %v1915_v4, %v1494_v29 }
 0x1f6   :  { %v1341_v25 = vpop.f32.mrf.mxu0  ;;  %v1500_v30 = vpop.f32.mrf.mxu1 }
 0x1f7   :  { %v1917_v57 = vmax.f32 %v3881_v48, %v3879_v14  ;;  %v1920_v62 = vmax.f32 %v1339_v35, %v1341_v25  ;;  %v1844_v48 = vld [vmem:[%s4123_s4 + $0x28] sm:$0xff] }
 0x1f8   :  { %v1345_v53 = vpop.f32.mrf.mxu0  ;;  %v3885_v28 = vpop.f32.mrf.mxu1 }
 0x1f9   :  { %v3887_v12 = vmax.f32 %v1920_v62, %v1500_v30 }
 0x1fa   :  { %v1347_v34 = vpop.f32.mrf.mxu0  ;;  %v1506_v0 = vpop.f32.mrf.mxu1 }
 0x1fb   :  { %v1922_v63 = vmax.f32 %v3887_v12, %v3885_v28  ;;  %v1925_v8 = vmax.f32 %v1345_v53, %v1347_v34  ;;  %v1845_v12 = vld [vmem:[%s4123_s4 + $0x30] sm:$0xff] }
 0x1fc   :  { %v1351_v11 = vpop.f32.mrf.mxu0  ;;  %v3891_v20 = vpop.f32.mrf.mxu1 }
 0x1fd   :  { %v3893_v50 = vmax.f32 %v1925_v8, %v1506_v0 }
 0x1fe   :  { %v1353_v56 = vpop.f32.mrf.mxu0  ;;  %v1512_v5 = vpop.f32.mrf.mxu1 }
 0x1ff   :  { %v1927_v19 = vmax.f32 %v3893_v50, %v3891_v20  ;;  %v1930_v3 = vmax.f32 %v1351_v11, %v1353_v56  ;;  %v1846_v50 = vld [vmem:[%s4123_s4 + $0x38] sm:$0xff] }
 0x200   :  { %v3899_v46 = vpop.f32.mrf.mxu1 }
 0x201   :  { %v3897_v26 = vmax.f32 %v1930_v3, %v1512_v5 }
 0x203   :  { %v1932_v47 = vmax.f32 %v3897_v26, %v3899_v46 }
 0x205   :  { %v1583_v40 = vpop.f32.mrf.mxu0 }
 0x206   :  { %v1744_v17 = vpop.f32.mrf.mxu1 }
 0x207   :  { %v1585_v21 = vpop.f32.mrf.mxu0 }
 0x208   :  { %v1968_v27 = vmax.f32 %v1583_v40, %v1585_v21  ;;  %v1746_v2 = vpop.f32.mrf.mxu1 }
 0x209   :  { %v1589_v59 = vpop.f32.mrf.mxu0 }
 0x20a   :  { %v1969_v13 = vmax.f32 %v1968_v27, %v1744_v17  ;;  %v1750_v32 = vpop.f32.mrf.mxu1 }
 0x20b   :  { %v1591_v60 = vpop.f32.mrf.mxu0 }
 0x20c   :  { %v1970_v49 = vmax.f32 %v1969_v13, %v1746_v2  ;;  %v1973_v41 = vmax.f32 %v1589_v59, %v1591_v60  ;;  %v1752_v51 = vpop.f32.mrf.mxu1 }
 0x20d   :  { %v1595_v44 = vpop.f32.mrf.mxu0 }
 0x20e   :  { %v1974_v9 = vmax.f32 %v1973_v41, %v1750_v32  ;;  %1971 = vmax.xlane.f32.xlu1 %v1970_v49  ;;  %v1756_v10 = vpop.f32.mrf.mxu1 }
 0x20f   :  { %v1597_v16 = vpop.f32.mrf.mxu0 }
 0x210   :  { %v1975_v31 = vmax.f32 %v1974_v9, %v1752_v51  ;;  %v1978_v7 = vmax.f32 %v1595_v44, %v1597_v16  ;;  %v1758_v43 = vpop.f32.mrf.mxu1 }
 0x211   :  { %v1601_v45 = vpop.f32.mrf.mxu0 }
 0x212   :  { %v1979_v58 = vmax.f32 %v1978_v7, %v1756_v10  ;;  %1976 = vmax.xlane.f32.xlu0 %v1975_v31  ;;  %v1762_v42 = vpop.f32.mrf.mxu1 }
 0x213   :  { %v1603_v1 = vpop.f32.mrf.mxu0 }
 0x214   :  { %v1980_v23 = vmax.f32 %v1979_v58, %v1758_v43  ;;  %v1983_v36 = vmax.f32 %v1601_v45, %v1603_v1  ;;  %v1764_v29 = vpop.f32.mrf.mxu1 }
 0x215   :  { %v1607_v24 = vpop.f32.mrf.mxu0 }
 0x216   :  { %v1984_v4 = vmax.f32 %v1983_v36, %v1762_v42  ;;  %1981 = vmax.xlane.f32.xlu0 %v1980_v23  ;;  %v1768_v35 = vpop.f32.mrf.mxu1 }
 0x217   :  { %v1609_v25 = vpop.f32.mrf.mxu0 }
 0x218   :  { %v1985_v30 = vmax.f32 %v1984_v4, %v1764_v29  ;;  %v1988_v62 = vmax.f32 %v1607_v24, %v1609_v25  ;;  %v1770_v53 = vpop.f32.mrf.mxu1 }
 0x219   :  { %v1613_v34 = vpop.f32.mrf.mxu0 }
 0x21a   :  { %v1989_v0 = vmax.f32 %v1988_v62, %v1768_v35  ;;  %1986 = vmax.xlane.f32.xlu1 %v1985_v30  ;;  %v1774_v8 = vpop.f32.mrf.mxu1 }
 0x21b   :  { %v1615_v11 = vpop.f32.mrf.mxu0 }
 0x21c   :  { %v1990_v56 = vmax.f32 %v1989_v0, %v1770_v53  ;;  %v1993_v5 = vmax.f32 %v1613_v34, %v1615_v11  ;;  %v1776_v3 = vpop.f32.mrf.mxu1 }
 0x21d   :  { %v1619_v40 = vpop.f32.mrf.mxu0 }
 0x21e   :  { %v1994_v17 = vmax.f32 %v1993_v5, %v1774_v8  ;;  %1991 = vmax.xlane.f32.xlu0 %v1990_v56  ;;  %v1780_v21 = vpop.f32.mrf.mxu1 }
 0x21f   :  { %v1621_v27 = vpop.f32.mrf.mxu0 }
 0x220   :  { %v1995_v2 = vmax.f32 %v1994_v17, %v1776_v3  ;;  %v1998_v59 = vmax.f32 %v1619_v40, %v1621_v27  ;;  %v1782_v13 = vpop.f32.mrf.mxu1 }
 0x221   :  { %v1625_v32 = vpop.f32.mrf.mxu0 }
 0x222   :  { %v1999_v60 = vmax.f32 %v1998_v59, %v1780_v21  ;;  %1996 = vmax.xlane.f32.xlu1 %v1995_v2  ;;  %v1786_v49 = vpop.f32.mrf.mxu1 }
 0x223   :  { %v1627_v41 = vpop.f32.mrf.mxu0 }
 0x224   :  { %v2000_v51 = vmax.f32 %v1999_v60, %v1782_v13  ;;  %v2003_v44 = vmax.f32 %v1625_v32, %v1627_v41  ;;  %v1788_v9 = vpop.f32.mrf.mxu1 }
 0x225   :  { %v1631_v10 = vpop.f32.mrf.mxu0 }
 0x226   :  { %v2004_v16 = vmax.f32 %v2003_v44, %v1786_v49  ;;  %2001 = vmax.xlane.f32.xlu0 %v2000_v51  ;;  %v1792_v31 = vpop.f32.mrf.mxu1 }
 0x227   :  { %v1633_v7 = vpop.f32.mrf.mxu0 }
 0x228   :  { %v2005_v43 = vmax.f32 %v2004_v16, %v1788_v9  ;;  %v2008_v45 = vmax.f32 %v1631_v10, %v1633_v7  ;;  %v1794_v58 = vpop.f32.mrf.mxu1 }
 0x229   :  { %v1637_v42 = vpop.f32.mrf.mxu0 }
 0x22a   :  { %v2009_v1 = vmax.f32 %v2008_v45, %v1792_v31  ;;  %2006 = vmax.xlane.f32.xlu1 %v2005_v43  ;;  %v1798_v23 = vpop.f32.mrf.mxu1 }
 0x22b   :  { %v1639_v36 = vpop.f32.mrf.mxu0 }
 0x22c   :  { %v2010_v29 = vmax.f32 %v2009_v1, %v1794_v58  ;;  %v2013_v24 = vmax.f32 %v1637_v42, %v1639_v36  ;;  %v1800_v4 = vpop.f32.mrf.mxu1 }
 0x22d   :  { %v1643_v35 = vpop.f32.mrf.mxu0 }
 0x22e   :  { %v2014_v25 = vmax.f32 %v2013_v24, %v1798_v23  ;;  %2011 = vmax.xlane.f32.xlu0 %v2010_v29  ;;  %v1804_v30 = vpop.f32.mrf.mxu1 }
 0x22f   :  { %v1645_v62 = vpop.f32.mrf.mxu0 }
 0x230   :  { %v2015_v53 = vmax.f32 %v2014_v25, %v1800_v4  ;;  %v2018_v34 = vmax.f32 %v1643_v35, %v1645_v62  ;;  %v1806_v0 = vpop.f32.mrf.mxu1  ;;  %v1839_v62 = vld [vmem:[%s4123_s4] sm:$0xff] }
 0x231   :  { %v1649_v8 = vpop.f32.mrf.mxu0 }
 0x232   :  { %v2019_v11 = vmax.f32 %v2018_v34, %v1804_v30  ;;  %2016 = vmax.xlane.f32.xlu1 %v2015_v53  ;;  %v1810_v56 = vpop.f32.mrf.mxu1 }
 0x233   :  { %v1651_v5 = vpop.f32.mrf.mxu0 }
 0x234   :  { %v2020_v3 = vmax.f32 %v2019_v11, %v1806_v0  ;;  %v2023_v40 = vmax.f32 %v1649_v8, %v1651_v5  ;;  %v1812_v17 = vpop.f32.mrf.mxu1 }
 0x235   :  { %v1655_v21 = vpop.f32.mrf.mxu0 }
 0x236   :  { %v2024_v27 = vmax.f32 %v2023_v40, %v1810_v56  ;;  %2021 = vmax.xlane.f32.xlu0 %v2020_v3  ;;  %v1816_v2 = vpop.f32.mrf.mxu1 }
 0x237   :  { %v1657_v59 = vpop.f32.mrf.mxu0 }
 0x238   :  { %v2025_v13 = vmax.f32 %v2024_v27, %v1812_v17  ;;  %v2028_v32 = vmax.f32 %v1655_v21, %v1657_v59  ;;  %v1818_v60 = vpop.f32.mrf.mxu1 }
 0x239   :  { %v1661_v49 = vpop.f32.mrf.mxu0 }
 0x23a   :  { %v2029_v41 = vmax.f32 %v2028_v32, %v1816_v2  ;;  %2026 = vmax.xlane.f32.xlu1 %v2025_v13  ;;  %v1822_v51 = vpop.f32.mrf.mxu1 }
 0x23b   :  { %v1663_v44 = vpop.f32.mrf.mxu0 }
 0x23c   :  { %v2030_v9 = vmax.f32 %v2029_v41, %v1818_v60  ;;  %v2033_v10 = vmax.f32 %v1661_v49, %v1663_v44  ;;  %v1824_v16 = vpop.f32.mrf.mxu1  ;;  %v1847_v60 = vld [vmem:[%s4123_s4 + $0x40] sm:$0xff] }
 0x23d   :  { %v1667_v31 = vpop.f32.mrf.mxu0 }
 0x23e   :  { %v2034_v7 = vmax.f32 %v2033_v10, %v1822_v51  ;;  %2031 = vmax.xlane.f32.xlu0 %v2030_v9  ;;  %v1828_v43 = vpop.f32.mrf.mxu1  ;;  %v1848_v51 = vld [vmem:[%s4123_s4 + $0x48] sm:$0xff]  ;;  %v1849_v10 = vld [vmem:[%s4123_s4 + $0x50] sm:$0xff] }
 0x23f   :  { %v1669_v45 = vpop.f32.mrf.mxu0 }
 0x240   :  { %v2035_v58 = vmax.f32 %v2034_v7, %v1824_v16  ;;  %v2038_v42 = vmax.f32 %v1667_v31, %v1669_v45  ;;  %v1830_v1 = vpop.f32.mrf.mxu1  ;;  %v1850_v7 = vld [vmem:[%s4123_s4 + $0x58] sm:$0xff] }
 0x241   :  { %v1673_v23 = vpop.f32.mrf.mxu0 }
 0x242   :  { %v2039_v36 = vmax.f32 %v2038_v42, %v1828_v43  ;;  %2036 = vmax.xlane.f32.xlu1 %v2035_v58  ;;  %v1834_v35 = vpop.f32.mrf.mxu1  ;;  %v1851_v58 = vld [vmem:[%s4123_s4 + $0x60] sm:$0xff] }
 0x243   :  { %v1675_v29 = vpop.f32.mrf.mxu0 }
 0x244   :  { %v2040_v24 = vmax.f32 %v2039_v36, %v1830_v1  ;;  %v2043_v4 = vmax.f32 %v1673_v23, %v1675_v29  ;;  %v1836_v30 = vpop.f32.mrf.mxu1  ;;  %v1852_v23 = vld [vmem:[%s4123_s4 + $0x68] sm:$0xff] }
 0x246   :  { %1903 = vmax.xlane.f32.xlu1 %v1902_v55  ;;  %2041 = vmax.xlane.f32.xlu0 %v2040_v24  ;;  %v2044_v25 = vmax.f32 %v2043_v4, %v1834_v35  ;;  %v1853_v24 = vld [vmem:[%s4123_s4 + $0x70] sm:$0xff] }
 0x248   :  { %v2045_v53 = vmax.f32 %v2044_v25, %v1836_v30 }
 0x24a   :  { %1913 = vmax.xlane.f32.xlu1 %v1912_v54  ;;  %1898 = vmax.xlane.f32.xlu0 %v1897_v37 }
 0x24c   :  { %v1859_v34 = vpop.xlane.xlu0 %1858 }
 0x24d   :  { %v1935_v33 = vadd.f32 %v1859_v34, %v1839_v62 }
 0x24e   :  { %1908 = vmax.xlane.f32.xlu0 %v1907_v52  ;;  %2046 = vmax.xlane.f32.xlu1 %v2045_v53 }
 0x24f   :  { %1952 = vst.msk [vmem:[%s4124_s5] sm:$0xff] %vm1951_vm1, %v1935_v33 }
 0x252   :  { %1918 = vmax.xlane.f32.xlu0 %v1917_v57  ;;  %1923 = vmax.xlane.f32.xlu1 %v1922_v63  ;;  %v1864_v38 = vpop.xlane.xlu1 %1863 }
 0x253   :  { %v1936_v37 = vadd.f32 %v1864_v38, %v1840_v39 }
 0x255   :  { %1953 = vst.msk [vmem:[%s4124_s5 + $0x8] sm:$0xff] %vm1951_vm1, %v1936_v37 }
 0x256   :  { %1928 = vmax.xlane.f32.xlu0 %v1927_v19  ;;  %1933 = vmax.xlane.f32.xlu1 %v1932_v47  ;;  %v1869_v55 = vpop.xlane.xlu0 %1868 }
 0x257   :  { %v1937_v61 = vadd.f32 %v1869_v55, %v1841_v6 }
 0x259   :  { %1954 = vst.msk [vmem:[%s4124_s5 + $0x10] sm:$0xff] %vm1951_vm1, %v1937_v61 }
 0x25b   :  { %v1874_v52 = vpop.xlane.xlu1 %1873 }
 0x25c   :  { %v1938_v18 = vadd.f32 %v1874_v52, %v1842_v22 }
 0x25e   :  { %1955 = vst.msk [vmem:[%s4124_s5 + $0x18] sm:$0xff] %vm1951_vm1, %v1938_v18 }
 0x25f   :  { %v1879_v54 = vpop.xlane.xlu0 %1878 }
 0x260   :  { %v1939_v14 = vadd.f32 %v1879_v54, %v1843_v15 }
 0x262   :  { %1956 = vst.msk [vmem:[%s4124_s5 + $0x20] sm:$0xff] %vm1951_vm1, %v1939_v14 }
 0x263   :  { %v1884_v57 = vpop.xlane.xlu1 %1883 }
 0x264   :  { %v1940_v28 = vadd.f32 %v1884_v57, %v1844_v48 }
 0x266   :  { %1957 = vst.msk [vmem:[%s4124_s5 + $0x28] sm:$0xff] %vm1951_vm1, %v1940_v28 }
 0x267   :  { %v1889_v63 = vpop.xlane.xlu0 %1888 }
 0x268   :  { %v1941_v20 = vadd.f32 %v1889_v63, %v1845_v12 }
 0x26a   :  { %1958 = vst.msk [vmem:[%s4124_s5 + $0x30] sm:$0xff] %vm1951_vm1, %v1941_v20 }
 0x26b   :  { %v1894_v19 = vpop.xlane.xlu1 %1893 }
 0x26c   :  { %v1942_v26 = vadd.f32 %v1894_v19, %v1846_v50 }
 0x26e   :  { %1959 = vst.msk [vmem:[%s4124_s5 + $0x38] sm:$0xff] %vm1951_vm1, %v1942_v26 }
 0x297   :  { %v1972_v46 = vpop.xlane.xlu1 %1971 }
 0x298   :  { %v2048_v47 = vadd.f32 %v1972_v46, %v1839_v62 }
 0x29a   :  { %2080 = vrot.lane.b32.xlu0 %v2048_v47, %s2376_s11 }
 0x29b   :  { %v1977_v0 = vpop.xlane.xlu0 %1976 }
 0x29c   :  { %v2049_v8 = vadd.f32 %v1977_v0, %v1840_v39  ;;  %v1854_v39 = vld [vmem:[%s4123_s4 + $0x78] sm:$0xff] }
 0x29e   :  { %2082 = vrot.lane.b32.xlu1 %v2049_v8, %s2376_s11 }
 0x29f   :  { %v1982_v11 = vpop.xlane.xlu0 %1981 }
 0x2a0   :  { %v2050_v56 = vadd.f32 %v1982_v11, %v1841_v6 }
 0x2a2   :  { %2084 = vrot.lane.b32.xlu1 %v2050_v56, %s2376_s11 }
 0x2a3   :  { %v1987_v5 = vpop.xlane.xlu1 %1986 }
 0x2a4   :  { %v2051_v3 = vadd.f32 %v1987_v5, %v1842_v22 }
 0x2a6   :  { %2086 = vrot.lane.b32.xlu0 %v2051_v3, %s2376_s11 }
 0x2a7   :  { %v1992_v40 = vpop.xlane.xlu0 %1991 }
 0x2a8   :  { %v2052_v17 = vadd.f32 %v1992_v40, %v1843_v15 }
 0x2aa   :  { %2088 = vrot.lane.b32.xlu1 %v2052_v17, %s2376_s11 }
 0x2ab   :  { %v1997_v21 = vpop.xlane.xlu1 %1996 }
 0x2ac   :  { %v2053_v27 = vadd.f32 %v1997_v21, %v1844_v48 }
 0x2ae   :  { %2090 = vrot.lane.b32.xlu0 %v2053_v27, %s2376_s11 }
 0x2af   :  { %v2002_v2 = vpop.xlane.xlu0 %2001 }
 0x2b0   :  { %v2054_v59 = vadd.f32 %v2002_v2, %v1845_v12 }
 0x2b2   :  { %2092 = vrot.lane.b32.xlu1 %v2054_v59, %s2376_s11 }
 0x2b3   :  { %v2007_v13 = vpop.xlane.xlu1 %2006 }
 0x2b4   :  { %v2055_v32 = vadd.f32 %v2007_v13, %v1846_v50 }
 0x2b6   :  { %2094 = vrot.lane.b32.xlu0 %v2055_v32, %s2376_s11 }
 0x2b7   :  { %v2012_v49 = vpop.xlane.xlu0 %2011 }
 0x2b8   :  { %v2056_v41 = vadd.f32 %v2012_v49, %v1847_v60 }
 0x2ba   :  { %2096 = vrot.lane.b32.xlu1 %v2056_v41, %s2376_s11 }
 0x2bb   :  { %v2017_v44 = vpop.xlane.xlu1 %2016 }
 0x2bc   :  { %v2057_v9 = vadd.f32 %v2017_v44, %v1848_v51 }
 0x2be   :  { %2098 = vrot.lane.b32.xlu0 %v2057_v9, %s2376_s11 }
 0x2bf   :  { %v2022_v16 = vpop.xlane.xlu0 %2021 }
 0x2c0   :  { %v2058_v31 = vadd.f32 %v2022_v16, %v1849_v10 }
 0x2c2   :  { %2100 = vrot.lane.b32.xlu1 %v2058_v31, %s2376_s11 }
 0x2c3   :  { %v2027_v43 = vpop.xlane.xlu1 %2026 }
 0x2c4   :  { %v2059_v45 = vadd.f32 %v2027_v43, %v1850_v7 }
 0x2c6   :  { %2102 = vrot.lane.b32.xlu0 %v2059_v45, %s2376_s11 }
 0x2c7   :  { %v2032_v42 = vpop.xlane.xlu0 %2031 }
 0x2c8   :  { %v2060_v1 = vadd.f32 %v2032_v42, %v1851_v58 }
 0x2ca   :  { %2104 = vrot.lane.b32.xlu1 %v2060_v1, %s2376_s11 }
 0x2cb   :  { %v2037_v36 = vpop.xlane.xlu1 %2036 }
 0x2cc   :  { %v2061_v29 = vadd.f32 %v2037_v36, %v1852_v23 }
 0x2ce   :  { %2106 = vrot.lane.b32.xlu0 %v2061_v29, %s2376_s11 }
 0x2cf   :  { %v1904_v4 = vpop.xlane.xlu1 %1903  ;;  %v2042_v35 = vpop.xlane.xlu0 %2041 }
 0x2d0   :  { %v1944_v25 = vadd.f32 %v1904_v4, %v1848_v51  ;;  %v2062_v30 = vadd.f32 %v2042_v35, %v1853_v24 }
 0x2d2   :  { %1961 = vst.msk [vmem:[%s4124_s5 + $0x48] sm:$0xff] %vm1951_vm1, %v1944_v25  ;;  %2108 = vrot.lane.b32.xlu1 %v2062_v30, %s2376_s11 }
 0x2d3   :  { %v1914_v62 = vpop.xlane.xlu1 %1913  ;;  %v1899_v53 = vpop.xlane.xlu0 %1898 }
 0x2d4   :  { %v1946_v34 = vadd.f32 %v1914_v62, %v1850_v7  ;;  %v1943_v33 = vadd.f32 %v1899_v53, %v1847_v60 }
 0x2d6   :  { %1963 = vst.msk [vmem:[%s4124_s5 + $0x58] sm:$0xff] %vm1951_vm1, %v1946_v34  ;;  %1960 = vst.msk [vmem:[%s4124_s5 + $0x40] sm:$0xff] %vm1951_vm1, %v1943_v33 }
 0x2d7   :  { %v1909_v38 = vpop.xlane.xlu0 %1908  ;;  %v2047_v37 = vpop.xlane.xlu1 %2046 }
 0x2d8   :  { %v1945_v6 = vadd.f32 %v1909_v38, %v1849_v10  ;;  %v2063_v55 = vadd.f32 %v2047_v37, %v1854_v39 }
 0x2da   :  { %1962 = vst.msk [vmem:[%s4124_s5 + $0x50] sm:$0xff] %vm1951_vm1, %v1945_v6  ;;  %2110 = vrot.lane.b32.xlu0 %v2063_v55, %s2376_s11 }
 0x2db   :  { %v1919_v61 = vpop.xlane.xlu0 %1918  ;;  %v1924_v22 = vpop.xlane.xlu1 %1923 }
 0x2dc   :  { %v1947_v52 = vadd.f32 %v1919_v61, %v1851_v58  ;;  %v1948_v18 = vadd.f32 %v1924_v22, %v1852_v23 }
 0x2de   :  { %1964 = vst.msk [vmem:[%s4124_s5 + $0x60] sm:$0xff] %vm1951_vm1, %v1947_v52  ;;  %1965 = vst.msk [vmem:[%s4124_s5 + $0x68] sm:$0xff] %vm1951_vm1, %v1948_v18 }
 0x2df   :  { %v1929_v15 = vpop.xlane.xlu0 %1928  ;;  %v1934_v54 = vpop.xlane.xlu1 %1933 }
 0x2e0   :  { %v1949_v14 = vadd.f32 %v1929_v15, %v1853_v24  ;;  %v1950_v48 = vadd.f32 %v1934_v54, %v1854_v39 }
 0x2e2   :  { %1966 = vst.msk [vmem:[%s4124_s5 + $0x70] sm:$0xff] %vm1951_vm1, %v1949_v14  ;;  %1967 = vst.msk [vmem:[%s4124_s5 + $0x78] sm:$0xff] %vm1951_vm1, %v1950_v48 }
 0x30c   :  { %v2081_v57 = vpop.permute.xlu0 %2080 }
 0x30d   :  { %2129 = vst.msk [vmem:[%s4124_s5] sm:$0xff] %vm2128_vm2, %v2081_v57 }
 0x310   :  { %v2083_v28 = vpop.permute.xlu1 %2082 }
 0x311   :  { %2130 = vst.msk [vmem:[%s4124_s5 + $0x8] sm:$0xff] %vm2128_vm2, %v2083_v28 }
 0x314   :  { %v2085_v12 = vpop.permute.xlu1 %2084 }
 0x315   :  { %2131 = vst.msk [vmem:[%s4124_s5 + $0x10] sm:$0xff] %vm2128_vm2, %v2085_v12 }
 0x318   :  { %v2087_v63 = vpop.permute.xlu0 %2086 }
 0x319   :  { %2132 = vst.msk [vmem:[%s4124_s5 + $0x18] sm:$0xff] %vm2128_vm2, %v2087_v63 }
 0x31c   :  { %v2089_v20 = vpop.permute.xlu1 %2088 }
 0x31d   :  { %2133 = vst.msk [vmem:[%s4124_s5 + $0x20] sm:$0xff] %vm2128_vm2, %v2089_v20 }
 0x320   :  { %v2091_v50 = vpop.permute.xlu0 %2090 }
 0x321   :  { %2134 = vst.msk [vmem:[%s4124_s5 + $0x28] sm:$0xff] %vm2128_vm2, %v2091_v50 }
 0x324   :  { %v2093_v19 = vpop.permute.xlu1 %2092 }
 0x325   :  { %2135 = vst.msk [vmem:[%s4124_s5 + $0x30] sm:$0xff] %vm2128_vm2, %v2093_v19 }
 0x328   :  { %v2095_v26 = vpop.permute.xlu0 %2094 }
 0x329   :  { %2136 = vst.msk [vmem:[%s4124_s5 + $0x38] sm:$0xff] %vm2128_vm2, %v2095_v26 }
 0x32c   :  { %v2097_v46 = vpop.permute.xlu1 %2096 }
 0x32d   :  { %2137 = vst.msk [vmem:[%s4124_s5 + $0x40] sm:$0xff] %vm2128_vm2, %v2097_v46 }
 0x330   :  { %v2099_v47 = vpop.permute.xlu0 %2098 }
 0x331   :  { %2138 = vst.msk [vmem:[%s4124_s5 + $0x48] sm:$0xff] %vm2128_vm2, %v2099_v47 }
 0x334   :  { %v2101_v0 = vpop.permute.xlu1 %2100 }
 0x335   :  { %2139 = vst.msk [vmem:[%s4124_s5 + $0x50] sm:$0xff] %vm2128_vm2, %v2101_v0 }
 0x338   :  { %v2103_v8 = vpop.permute.xlu0 %2102 }
 0x339   :  { %2140 = vst.msk [vmem:[%s4124_s5 + $0x58] sm:$0xff] %vm2128_vm2, %v2103_v8 }
 0x33c   :  { %v2105_v11 = vpop.permute.xlu1 %2104 }
 0x33d   :  { %2141 = vst.msk [vmem:[%s4124_s5 + $0x60] sm:$0xff] %vm2128_vm2, %v2105_v11 }
 0x340   :  { %v2107_v56 = vpop.permute.xlu0 %2106 }
 0x341   :  { %2142 = vst.msk [vmem:[%s4124_s5 + $0x68] sm:$0xff] %vm2128_vm2, %v2107_v56 }
 0x344   :  { %v2109_v5 = vpop.permute.xlu1 %2108 }
 0x345   :  { %2143 = vst.msk [vmem:[%s4124_s5 + $0x70] sm:$0xff] %vm2128_vm2, %v2109_v5 }
 0x34c   :  { %v2111_v3 = vpop.permute.xlu0 %2110 }
 0x34d   :  { %2144 = vst.msk [vmem:[%s4124_s5 + $0x78] sm:$0xff] %vm2128_vm2, %v2111_v3 }

</bundles_post_ra>
